<compile_context>
chip_gen: v5e
topology: v5e:2x2
jax: 0.10.0
libtpu: 0.0.40
codegen_flags: <defaults>
</compile_context>

<pallas_src>
import math
import jax
import jax.numpy as jnp
from jax import lax
from jax.experimental import pallas as pl
from jax.experimental.pallas import tpu as pltpu

# Synthetic bond feature dims (bond_dir, bond_type, is_in_ring), as in the module.
FULL_BOND_FEATURE_DIMS = [7, 5, 2]                 # get_bond_feature_dims(bond_id_names)
VOCABS = [d + 5 for d in FULL_BOND_FEATURE_DIMS]   # Embedding(dim + 5, emb_dim)
NUM_FEATS = len(VOCABS)
V_MAX = max(VOCABS)


def _xavier_uniform(key, shape, dtype=jnp.float32):
    # torch.nn.init.xavier_uniform_: U(-a, a), a = sqrt(6 / (fan_in + fan_out))
    fan_in, fan_out = shape[0], shape[1]
    a = math.sqrt(6.0 / (fan_in + fan_out))
    return jax.random.uniform(key, shape, dtype, minval=-a, maxval=a)


def make_bond_encoder_params(key, emb_dim):
    """Stack the F embedding tables into one (F, V_MAX, emb_dim) array (zero-padded)."""
    tables = []
    for i, v in enumerate(VOCABS):
        k = jax.random.fold_in(key, i)
        w = _xavier_uniform(k, (v, emb_dim))
        if v < V_MAX:
            w = jnp.concatenate([w, jnp.zeros((V_MAX - v, emb_dim), w.dtype)], axis=0)
        tables.append(w)
    return jnp.stack(tables, axis=0)  # (F, V_MAX, D)


def _make_fused_table(emb_tables, group):
    """Block-diagonal fused table W of shape (G*F*V, G*D).

    W[g*F*V + i*V + v, g*D:(g+1)*D] = emb_tables[i, v], so that
    multi_hot(fused idx) @ W yields the embedding sums of G consecutive edges
    concatenated along 128 lanes (lane-dense output rows).
    """
    F, V, D = emb_tables.shape
    flat = emb_tables.reshape(F * V, D)            # (F*V, D)
    w = jnp.zeros((group * F * V, group * D), flat.dtype)
    for g in range(group):
        w = w.at[g * F * V:(g + 1) * F * V, g * D:(g + 1) * D].set(flat)
    return w


def bond_encoder_kernel(edge_ref, w_ref, out_ref):
    # edge_ref: (TR, G*F) int32   w_ref: (G*F*V, G*D) f32   out_ref: (TR, G*D) f32
    tr, gf = edge_ref.shape
    k = w_ref.shape[0]
    v = k // gf                                        # padded per-feature vocab

    iota = lax.broadcasted_iota(jnp.int32, (tr, k), 1)
    # Offset every feature slot into its disjoint range of the fused vocab.
    offs = lax.broadcasted_iota(jnp.int32, (1, gf), 1) * v
    ids = edge_ref[...] + offs                         # (TR, G*F)

    # Each slot j hits a disjoint lane range [j*v, (j+1)*v), so `where`
    # accumulation builds the exact fused multi-hot with one cmp + one select
    # per slot (static unroll over G*F = 12 for emb_dim=32).
    one_hot = jnp.zeros((tr, k), jnp.float32)
    for j in range(gf):
        one_hot = jnp.where(iota == ids[:, j:j + 1], 1.0, one_hot)

    # Single MXU matmul replaces the 3 per-feature gathers; output is a fully
    # lane-dense (TR, 128) tile -> unmasked vector stores.
    out_ref[...] = jnp.dot(one_hot, w_ref[...], preferred_element_type=jnp.float32)


def bond_encoder(edge_attr, emb_tables, *, tile_e=512):
    """edge_attr: (E, F) int; emb_tables: (F, V, D) f32 -> (E, D) f32."""
    E, F = edge_attr.shape
    Fv, V, D = emb_tables.shape
    assert F == Fv == NUM_FEATS

    # Group G edges per lane-dense output row (G*D == 128 when D divides 128).
    group = 128 // D if (D <= 128 and 128 % D == 0) else 1
    assert tile_e % (group * 8) == 0, "tile_e must be a multiple of 8 sublane groups"
    tr = tile_e // group                               # kernel rows per grid step

    # Pad E to a multiple of tile_e (index 0 is valid; padded rows are sliced off).
    e_pad = pl.cdiv(E, tile_e) * tile_e
    edge_attr = edge_attr.astype(jnp.int32)
    if e_pad != E:
        edge_attr = jnp.concatenate(
            [edge_attr, jnp.zeros((e_pad - E, F), jnp.int32)], axis=0)
    # Row-major regroup: row r holds the F indices of edges r*G .. r*G+G-1.
    edge_grouped = edge_attr.reshape(e_pad // group, group * F)

    w = _make_fused_table(emb_tables, group)           # (G*F*V, G*D), ~72 KiB f32
    k, gd = w.shape
    n_rows = e_pad // group
    grid = e_pad // tile_e

    out2d = pl.pallas_call(
        bond_encoder_kernel,
        out_shape=jax.ShapeDtypeStruct((n_rows, gd), jnp.float32),
        grid_spec=pltpu.PrefetchScalarGridSpec(
            num_scalar_prefetch=0,
            grid=(grid,),
            in_specs=[
                pl.BlockSpec((tr, group * F), lambda i: (i, 0)),  # edge index tile
                pl.BlockSpec((k, gd), lambda i: (0, 0)),          # resident fused table
            ],
            out_specs=pl.BlockSpec((tr, gd), lambda i: (i, 0)),   # lane-dense (TR,128)
        ),
        compiler_params=pltpu.CompilerParams(
            dimension_semantics=("parallel",)),
    )(edge_grouped, w)

    # Free contiguous view back to (E, D).
    return out2d.reshape(e_pad, D)[:E]


def bond_encoder_ref(edge_attr, emb_tables):
    out = 0
    for i in range(edge_attr.shape[1]):
        out = out + jnp.take(emb_tables[i], edge_attr[:, i], axis=0)
    return out


if __name__ == "__main__":
    key = jax.random.PRNGKey(0)
    emb_dim = 32
    E = 1000   # arbitrary (not a tile multiple) to exercise the padding path

    emb_tables = make_bond_encoder_params(key, emb_dim)  # (3, V_MAX, 32)

    # Deterministic integer bond features, each within its own vocab.
    ks = jax.random.split(jax.random.fold_in(key, 123), NUM_FEATS)
    cols = [jax.random.randint(ks[i], (E, 1), 0, VOCABS[i], dtype=jnp.int32)
            for i in range(NUM_FEATS)]
    edge_attr = jnp.concatenate(cols, axis=1)            # (E, 3) int32

    out = bond_encoder(edge_attr, emb_tables, tile_e=512)  # grid = 2
    out = jax.block_until_ready(out)

    ref = bond_encoder_ref(edge_attr, emb_tables)
    assert out.shape == (E, emb_dim) and out.dtype == jnp.float32
    assert jnp.allclose(out, ref, atol=1e-5, rtol=1e-5), "mismatch vs reference"

    print("KERNEL_OK")
</pallas_src>

<mosaic_0001>
module attributes {stable_mosaic.version = 11 : i64} {
  func.func @bond_encoder_kernel(%arg0: i32, %arg1: memref<128x12xi32, #tpu.memory_space<vmem>>, %arg2: memref<144x128xf32, #tpu.memory_space<vmem>>, %arg3: memref<128x128xf32, #tpu.memory_space<vmem>>) attributes {dimension_semantics = [#tpu.dimension_semantics<parallel>], iteration_bounds = array<i64: 2>, scalar_prefetch = 0 : i64, scratch_operands = 0 : i64, tpu.core_type = #tpu.core_type<tc>, window_params = [{transform_indices = @transform_0, window_bounds = array<i64: 128, 12>}, {pipeline_mode = #tpu.pipeline_mode<synchronous>, transform_indices = @transform_1, window_bounds = array<i64: 144, 128>}, {transform_indices = @transform_2, window_bounds = array<i64: 128, 128>}]} {
    %0 = tpu.iota {dimensions = array<i32: 1>} : vector<128x144xi32>
    %1 = tpu.iota {dimensions = array<i32: 1>} : vector<1x12xi32>
    %c12_i32 = arith.constant 12 : i32
    %2 = vector.broadcast %c12_i32 : i32 to vector<1x12xi32>
    %3 = arith.muli %1, %2 : vector<1x12xi32>
    %c0 = arith.constant 0 : index
    %c0_0 = arith.constant 0 : index
    %4 = vector.load %arg1[%c0, %c0_0] : memref<128x12xi32, #tpu.memory_space<vmem>>, vector<128x12xi32>
    %5 = vector.broadcast %3 : vector<1x12xi32> to vector<128x12xi32>
    %6 = arith.addi %4, %5 : vector<128x12xi32>
    %cst = arith.constant 0.000000e+00 : f32
    %7 = vector.broadcast %cst : f32 to vector<128x144xf32>
    %8 = vector.extract_strided_slice %6 {offsets = [0, 0], sizes = [128, 1], strides = [1, 1]} : vector<128x12xi32> to vector<128x1xi32>
    %9 = vector.broadcast %8 : vector<128x1xi32> to vector<128x144xi32>
    %10 = arith.cmpi eq, %0, %9 : vector<128x144xi32>
    %cst_1 = arith.constant 1.000000e+00 : f32
    %11 = vector.broadcast %cst_1 : f32 to vector<128x144xf32>
    %12 = arith.select %10, %11, %7 : vector<128x144xi1>, vector<128x144xf32>
    %13 = vector.extract_strided_slice %6 {offsets = [0, 1], sizes = [128, 1], strides = [1, 1]} : vector<128x12xi32> to vector<128x1xi32>
    %14 = vector.broadcast %13 : vector<128x1xi32> to vector<128x144xi32>
    %15 = arith.cmpi eq, %0, %14 : vector<128x144xi32>
    %cst_2 = arith.constant 1.000000e+00 : f32
    %16 = vector.broadcast %cst_2 : f32 to vector<128x144xf32>
    %17 = arith.select %15, %16, %12 : vector<128x144xi1>, vector<128x144xf32>
    %18 = vector.extract_strided_slice %6 {offsets = [0, 2], sizes = [128, 1], strides = [1, 1]} : vector<128x12xi32> to vector<128x1xi32>
    %19 = vector.broadcast %18 : vector<128x1xi32> to vector<128x144xi32>
    %20 = arith.cmpi eq, %0, %19 : vector<128x144xi32>
    %cst_3 = arith.constant 1.000000e+00 : f32
    %21 = vector.broadcast %cst_3 : f32 to vector<128x144xf32>
    %22 = arith.select %20, %21, %17 : vector<128x144xi1>, vector<128x144xf32>
    %23 = vector.extract_strided_slice %6 {offsets = [0, 3], sizes = [128, 1], strides = [1, 1]} : vector<128x12xi32> to vector<128x1xi32>
    %24 = vector.broadcast %23 : vector<128x1xi32> to vector<128x144xi32>
    %25 = arith.cmpi eq, %0, %24 : vector<128x144xi32>
    %cst_4 = arith.constant 1.000000e+00 : f32
    %26 = vector.broadcast %cst_4 : f32 to vector<128x144xf32>
    %27 = arith.select %25, %26, %22 : vector<128x144xi1>, vector<128x144xf32>
    %28 = vector.extract_strided_slice %6 {offsets = [0, 4], sizes = [128, 1], strides = [1, 1]} : vector<128x12xi32> to vector<128x1xi32>
    %29 = vector.broadcast %28 : vector<128x1xi32> to vector<128x144xi32>
    %30 = arith.cmpi eq, %0, %29 : vector<128x144xi32>
    %cst_5 = arith.constant 1.000000e+00 : f32
    %31 = vector.broadcast %cst_5 : f32 to vector<128x144xf32>
    %32 = arith.select %30, %31, %27 : vector<128x144xi1>, vector<128x144xf32>
    %33 = vector.extract_strided_slice %6 {offsets = [0, 5], sizes = [128, 1], strides = [1, 1]} : vector<128x12xi32> to vector<128x1xi32>
    %34 = vector.broadcast %33 : vector<128x1xi32> to vector<128x144xi32>
    %35 = arith.cmpi eq, %0, %34 : vector<128x144xi32>
    %cst_6 = arith.constant 1.000000e+00 : f32
    %36 = vector.broadcast %cst_6 : f32 to vector<128x144xf32>
    %37 = arith.select %35, %36, %32 : vector<128x144xi1>, vector<128x144xf32>
    %38 = vector.extract_strided_slice %6 {offsets = [0, 6], sizes = [128, 1], strides = [1, 1]} : vector<128x12xi32> to vector<128x1xi32>
    %39 = vector.broadcast %38 : vector<128x1xi32> to vector<128x144xi32>
    %40 = arith.cmpi eq, %0, %39 : vector<128x144xi32>
    %cst_7 = arith.constant 1.000000e+00 : f32
    %41 = vector.broadcast %cst_7 : f32 to vector<128x144xf32>
    %42 = arith.select %40, %41, %37 : vector<128x144xi1>, vector<128x144xf32>
    %43 = vector.extract_strided_slice %6 {offsets = [0, 7], sizes = [128, 1], strides = [1, 1]} : vector<128x12xi32> to vector<128x1xi32>
    %44 = vector.broadcast %43 : vector<128x1xi32> to vector<128x144xi32>
    %45 = arith.cmpi eq, %0, %44 : vector<128x144xi32>
    %cst_8 = arith.constant 1.000000e+00 : f32
    %46 = vector.broadcast %cst_8 : f32 to vector<128x144xf32>
    %47 = arith.select %45, %46, %42 : vector<128x144xi1>, vector<128x144xf32>
    %48 = vector.extract_strided_slice %6 {offsets = [0, 8], sizes = [128, 1], strides = [1, 1]} : vector<128x12xi32> to vector<128x1xi32>
    %49 = vector.broadcast %48 : vector<128x1xi32> to vector<128x144xi32>
    %50 = arith.cmpi eq, %0, %49 : vector<128x144xi32>
    %cst_9 = arith.constant 1.000000e+00 : f32
    %51 = vector.broadcast %cst_9 : f32 to vector<128x144xf32>
    %52 = arith.select %50, %51, %47 : vector<128x144xi1>, vector<128x144xf32>
    %53 = vector.extract_strided_slice %6 {offsets = [0, 9], sizes = [128, 1], strides = [1, 1]} : vector<128x12xi32> to vector<128x1xi32>
    %54 = vector.broadcast %53 : vector<128x1xi32> to vector<128x144xi32>
    %55 = arith.cmpi eq, %0, %54 : vector<128x144xi32>
    %cst_10 = arith.constant 1.000000e+00 : f32
    %56 = vector.broadcast %cst_10 : f32 to vector<128x144xf32>
    %57 = arith.select %55, %56, %52 : vector<128x144xi1>, vector<128x144xf32>
    %58 = vector.extract_strided_slice %6 {offsets = [0, 10], sizes = [128, 1], strides = [1, 1]} : vector<128x12xi32> to vector<128x1xi32>
    %59 = vector.broadcast %58 : vector<128x1xi32> to vector<128x144xi32>
    %60 = arith.cmpi eq, %0, %59 : vector<128x144xi32>
    %cst_11 = arith.constant 1.000000e+00 : f32
    %61 = vector.broadcast %cst_11 : f32 to vector<128x144xf32>
    %62 = arith.select %60, %61, %57 : vector<128x144xi1>, vector<128x144xf32>
    %63 = vector.extract_strided_slice %6 {offsets = [0, 11], sizes = [128, 1], strides = [1, 1]} : vector<128x12xi32> to vector<128x1xi32>
    %64 = vector.broadcast %63 : vector<128x1xi32> to vector<128x144xi32>
    %65 = arith.cmpi eq, %0, %64 : vector<128x144xi32>
    %cst_12 = arith.constant 1.000000e+00 : f32
    %66 = vector.broadcast %cst_12 : f32 to vector<128x144xf32>
    %67 = arith.select %65, %66, %62 : vector<128x144xi1>, vector<128x144xf32>
    %c0_13 = arith.constant 0 : index
    %c0_14 = arith.constant 0 : index
    %68 = vector.load %arg2[%c0_13, %c0_14] : memref<144x128xf32, #tpu.memory_space<vmem>>, vector<144x128xf32>
    %cst_15 = arith.constant dense<0.000000e+00> : vector<128x128xf32>
    %69 = tpu.matmul %67, %68, %cst_15 {dimension_numbers = #tpu.dot_dimension_numbers<[1], [0], [0], [1], [0, 0, 1, 1], [], []>} : vector<128x144xf32>, vector<144x128xf32>, vector<128x128xf32> -> vector<128x128xf32>
    %c0_16 = arith.constant 0 : index
    %c0_17 = arith.constant 0 : index
    %70 = vector.load %arg3[%c0_16, %c0_17] : memref<128x128xf32, #tpu.memory_space<vmem>>, vector<128x128xf32>
    tpu.vector_store %arg3[%c0_16, %c0_17], %69 {strides = array<i32>} : memref<128x128xf32, #tpu.memory_space<vmem>>, vector<128x128xf32>,
    return
  }
  func.func @transform_0(%arg0: i32) -> (i32, i32) {
    %c0_i32 = arith.constant 0 : i32
    %c0_i32_0 = arith.constant 0 : i32
    return %arg0, %c0_i32 : i32, i32
  }
  func.func @transform_1(%arg0: i32) -> (i32, i32) {
    %c0_i32 = arith.constant 0 : i32
    %c0_i32_0 = arith.constant 0 : i32
    %c0_i32_1 = arith.constant 0 : i32
    return %c0_i32, %c0_i32_0 : i32, i32
  }
  func.func @transform_2(%arg0: i32) -> (i32, i32) {
    %c0_i32 = arith.constant 0 : i32
    %c0_i32_0 = arith.constant 0 : i32
    return %arg0, %c0_i32 : i32, i32
  }
}

</mosaic_0001>

<bundles_post_ra>
// kernel: tpu_custom_call.1
= control target key start
LH: loop header
LB: loop body
LE: loop exit
PB: predicated region body
PF: predicated region fallthrough
CT: control target
= control target key end

     0   :  { %7 = vsyncpa [#allocation3], 0  ;;  %s3815_s0 = inlined_call_operand.vmem [shape: s32[256,12], index: 0, kind: input, shape index: {}]   ;;  %s3816_s1 = inlined_call_operand.vmem [shape: f32[144,128], index: 1, kind: input, shape index: {}]   ;;  %s3817_s2 = inlined_call_operand.hbm [shape: f32[256,128], index: 2, kind: output, shape index: {}]  }
   0x1   :  { %9 = vsyncpa [#allocation3 + $0x1], 0  ;;  %s2082_s9 = smov 0   ;;  %s2084_s10 = smov 0  }
   0x2   :  { %s2086_s11 = smov 0   ;;  %s2088_s12 = smov 0  }
   0x3 LB: > { %s2103_s13 = sadd.s32 4294967295, %s2050_s12   ;;  %s1816_s14 = sadd.s32 4294967294, %s2050_s12   ;;  %s2050_s12 = sphi %s2088_s12, %s3898_s12   ;;  %s2046_s11 = sphi %s2086_s11, %s3897_s11   ;;  %s2042_s10 = sphi %s2084_s10, %s3896_s10   ;;  %s2038_s9 = sphi %s2082_s9, %s3895_s9  }
   0x4   : > { %s2107_s15 = sadd.s32 1, %s2050_s12   ;;  %s69_s16 = sadd.s32 1, %s2046_s11 }
   0x5   : > { %s66_s17 = ssub.s32 %s2050_s12, %s2107_s15  ;;  %p79_p0 = scmp.ne.s32.totalorder %s2046_s11, %s2042_s10 }
   0x6   : > { %p67_p1 = scmp.eq.s32.totalorder %s66_s17, 0  ;;  %p80_p2 = scmp.eq.s32.totalorder %s2103_s13, 1 }
   0x7   : > { %p85_p3 = scmp.ne.s32.totalorder %s2042_s10, %s2038_s9  ;;  %p86_p4 = scmp.eq.s32.totalorder %s1816_s14, 1 }
   0x8   : > { %s2118_s18 = scalar_select %p67_p1, %s2046_s11, %s69_s16  }
   0x9   : > { %p2120_p5 = por %p80_p2, %p79_p0  ;;  %p2124_p6 = por %p86_p4, %p85_p3 }
   0xa   : > { %p1819_p7 = scmp.ge.s32.totalorder %s2050_s12, 1  ;;  %p116_p8 = scmp.lt.s32.totalorder %s2050_s12, 3 }
   0xc   : > { %p117_p9 = pnand %p1819_p7, %p116_p8 }
   0xe   : > { %120 = sbr.rel (%p117_p9) target bundleno = 856 (0x358), region = 28 }
  0x13   : > { %s1821_s21 = sshll.u32 %s2103_s13, 4  ;;  %v145_v0 = vlaneseq  ;;  %v2052_v1 = vmov 0   ;;  %v2053_v36 = vmov 1   ;;  %v2054_v37 = vmov 2   ;;  %s135_s24 = sand.u32 1, %s2042_s10  }
  0x14   : > { %1935 = vset.pattern.permute.xlu2 %v2052_v1  ;;  %1934 = vset.pattern.permute.xlu1 %v2052_v1  ;;  %p139_p10 = scmp.lt.s32.totalorder %s1821_s21, 31  ;;  %v2055_v47 = vmov 3   ;;  %v2056_v63 = vmov 4   ;;  %s1844_s27 = sshll.u32 %s2103_s13, 7 }
  0x15   : > { %1933 = vset.pattern.permute.xlu0 %v2052_v1  ;;  %v2131_v2 = vand.u32 127, %v145_v0  ;;  %s1750_s30 = scalar_lea.hbm %s3817_s2, %s1844_s27  ;;  %s1739_s13 = scalar_lea.sflag [#allocation3], %s135_s24 }
  0x16   : > { %s3900_s21 = smov (!%p139_p10, %s1821_s21), 31  ;;  %s1753_s4 = sshll.u32 %s1750_s30, 4  ;;  %s1754_s4 = int_to_ptr.hbm [resolvable:$true] %s1753_s4 }
  0x17   : > { %v148_v3 = vmul.u32 12, %v2131_v2  ;;  %s1822_s22 = sshll.u32 %s3900_s21, 3  ;;  %s2002_s5 = sshra.s32 %s1754_s4, 4  ;;  %s2003_s5 = int_to_ptr.hbm [resolvable:$true] %s2002_s5 }
  0x18   : > { %s2137_s25 = scalar_lea.vmem %s3815_s0, %s1822_s22  ;;  %s2004_s6 = scalar_lea.hbm %s2003_s5, 128 }
  0x19   : > { %v153_v4 = vld [vmem:[%s2137_s25 + $0x20] sm:$0xff]  ;;  %v151_v5 = vld [vmem:[%s2137_s25 + $0x10] sm:$0xff]  ;;  %v154_v10 = vld [vmem:[%s2137_s25 + $0x28] sm:$0xff]  ;;  %p2005_p11 = scmp.ne.s32.totalorder %s2003_s5, %s2004_s6  ;;  %s2008_s14 = scalar_lea.hbm %s3817_s2, 256 }
  0x1a   : > { %v149_v6 = vld [vmem:[%s2137_s25] sm:$0xff]  ;;  %v2142_v7 = vadd.s32 %v153_v4, %v148_v3  ;;  %v2144_v8 = vadd.s32 %v151_v5, %v148_v3  ;;  %v152_v11 = vld [vmem:[%s2137_s25 + $0x18] sm:$0xff]  ;;  %v150_v12 = vld [vmem:[%s2137_s25 + $0x8] sm:$0xff]  ;;  %v2154_v13 = vadd.s32 %v154_v10, %v148_v3  ;;  %p2009_p0 = scmp.lt.s32.totalorder %s2003_s5, %s3817_s2  ;;  %p2010_p1 = scmp.lt.s32.totalorder %s2008_s14, %s2004_s6 }
  0x1b   : > { %v2146_v9 = vadd.s32 %v149_v6, %v148_v3  ;;  %v2156_v14 = vadd.s32 %v152_v11, %v148_v3  ;;  %v2158_v15 = vadd.s32 %v150_v12, %v148_v3  ;;  %v157_v16 = vld [vmem:[%s2137_s25 + $0x40] sm:$0xff]  ;;  %v156_v17 = vld [vmem:[%s2137_s25 + $0x38] sm:$0xff]  ;;  %v155_v18 = vld [vmem:[%s2137_s25 + $0x30] sm:$0xff]  ;;  %p2006_p12 = pnand %p2005_p11, %p2120_p5 }
  0x1c   : > { %194 = vperm.xlu2 %1935, %v2142_v7   ;;  %188 = vperm.xlu1 %1934, %v2144_v8   ;;  %v2166_v19 = vadd.s32 %v157_v16, %v148_v3  ;;  %v2168_v20 = vadd.s32 %v156_v17, %v148_v3  ;;  %v2170_v21 = vadd.s32 %v155_v18, %v148_v3  ;;  %v160_v22 = vld [vmem:[%s2137_s25 + $0x58] sm:$0xff]  ;;  %v159_v23 = vld [vmem:[%s2137_s25 + $0x50] sm:$0xff]  ;;  %v158_v24 = vld [vmem:[%s2137_s25 + $0x48] sm:$0xff]  ;;  %p2011_p2 = por %p2010_p1, %p2009_p0 }
  0x1d   : > { %182 = vperm.xlu0 %1933, %v2146_v9   ;;  %3847 = vst [vmem:[#allocation5_spill] sm:$0xff] %v2158_v15  ;;  %v2178_v25 = vadd.s32 %v160_v22, %v148_v3  ;;  %v2180_v26 = vadd.s32 %v159_v23, %v148_v3  ;;  %v2182_v27 = vadd.s32 %v158_v24, %v148_v3  ;;  %v163_v28 = vld [vmem:[%s2137_s25 + $0x70] sm:$0xff]  ;;  %v162_v29 = vld [vmem:[%s2137_s25 + $0x68] sm:$0xff]  ;;  %v161_v30 = vld [vmem:[%s2137_s25 + $0x60] sm:$0xff]  ;;  %v2057_v22 = vmov 5   ;;  %p2007_p13 = pneg %p2006_p12 }
  0x1e   : > { %3848 = vst [vmem:[#allocation6_spill] sm:$0xff] %v2170_v21  ;;  %v2190_v31 = vadd.s32 %v163_v28, %v148_v3  ;;  %v2192_v32 = vadd.s32 %v162_v29, %v148_v3  ;;  %v2194_v33 = vadd.s32 %v161_v30, %v148_v3  ;;  %v164_v34 = vld [vmem:[%s2137_s25 + $0x78] sm:$0xff]  ;;  %s1820_s25 = sshll.u32 %s135_s24, 7 }
  0x1f   : > { %3849 = vst [vmem:[#allocation7_spill] sm:$0xff] %v2178_v25  ;;  %v2200_v35 = vadd.s32 %v164_v34, %v148_v3  ;;  %s3727_s26 = scalar_lea.vmem [#allocation2], %s1820_s25  ;;  %p2012_p3 = pnand %p2011_p2, %p2007_p13 }
  0x20   : > { %3850 = vst [vmem:[#allocation8_spill] sm:$0xff] %v2182_v27  ;;  %s1751_s3 = sshll.u32 %s3727_s26, 4  ;;  %s1752_s3 = int_to_ptr.vmem [resolvable:$true] %s1751_s3 }
  0x21   : > { %3851 = vst [vmem:[#allocation9_spill] sm:$0xff] %v2190_v31 }
  0x22   : > { %3852 = vst [vmem:[#allocation10_spill] sm:$0xff] %v2194_v33 }
  0x24   : > { %197 = vperm.xlu2 %1935, %v2154_v13   ;;  %191 = vperm.xlu1 %1934, %v2156_v14  }
  0x25   : > { %185 = vperm.xlu0 %1933, %v2158_v15  }
  0x2c   : > { %206 = vperm.xlu2 %1935, %v2166_v19   ;;  %203 = vperm.xlu1 %1934, %v2168_v20  }
  0x2d   : > { %200 = vperm.xlu0 %1933, %v2170_v21  }
  0x34   : > { %215 = vperm.xlu2 %1935, %v2178_v25   ;;  %212 = vperm.xlu1 %1934, %v2180_v26  }
  0x35   : > { %209 = vperm.xlu0 %1933, %v2182_v27  }
  0x3c   : > { %224 = vperm.xlu2 %1935, %v2190_v31   ;;  %221 = vperm.xlu1 %1934, %v2192_v32  }
  0x3d   : > { %218 = vperm.xlu0 %1933, %v2194_v33  }
  0x44   : > { %1937 = vset.pattern.permute.xlu2 %v2053_v36  ;;  %1936 = vset.pattern.permute.xlu1 %v2053_v36 }
  0x45   : > { %227 = vperm.xlu0 %1933, %v2200_v35   ;;  %297 = vperm.xlu2 %1937, %v2158_v15  }
  0x46   : > { %294 = vperm.xlu1 %1936, %v2146_v9  }
  0x4d   : > { %1938 = vset.pattern.permute.xlu0 %v2053_v36  ;;  %306 = vperm.xlu2 %1937, %v2142_v7  }
  0x4e   : > { %303 = vperm.xlu1 %1936, %v2156_v14   ;;  %300 = vperm.xlu0 %1938, %v2144_v8  }
  0x55   : > { %312 = vperm.xlu2 %1937, %v2170_v21  }
  0x56   : > { %309 = vperm.xlu1 %1936, %v2154_v13   ;;  %315 = vperm.xlu0 %1938, %v2168_v20  }
  0x5d   : > { %321 = vperm.xlu2 %1937, %v2182_v27  }
  0x5e   : > { %318 = vperm.xlu1 %1936, %v2166_v19   ;;  %324 = vperm.xlu0 %1938, %v2180_v26  }
  0x65   : > { %330 = vperm.xlu2 %1937, %v2194_v33  }
  0x66   : > { %327 = vperm.xlu1 %1936, %v2178_v25   ;;  %333 = vperm.xlu0 %1938, %v2192_v32  }
  0x6d   : > { %339 = vperm.xlu2 %1937, %v2200_v35  }
  0x6e   : > { %336 = vperm.xlu1 %1936, %v2190_v31   ;;  %1939 = vset.pattern.permute.xlu0 %v2054_v37 }
  0x6f   : > { %406 = vperm.xlu0 %1939, %v2146_v9  }
  0x75   : > { %1941 = vset.pattern.permute.xlu2 %v2054_v37 }
  0x76   : > { %1940 = vset.pattern.permute.xlu1 %v2054_v37  ;;  %v2220_v38 = vpop.permute.xlu2 %194  ;;  %412 = vperm.xlu2 %1941, %v2144_v8  }
  0x77   : > { %3853 = vst [vmem:[#allocation11_spill] sm:$0xff] %v2220_v38  ;;  %409 = vperm.xlu1 %1940, %v2158_v15   ;;  %421 = vperm.xlu0 %1939, %v2154_v13  }
  0x7e   : > { %v2225_v39 = vpop.permute.xlu2 %197  ;;  %418 = vperm.xlu2 %1941, %v2142_v7  }
  0x7f   : > { %415 = vperm.xlu1 %1940, %v2156_v14   ;;  %430 = vperm.xlu0 %1939, %v2166_v19  }
  0x86   : > { %v2230_v40 = vpop.permute.xlu2 %206  ;;  %427 = vperm.xlu2 %1941, %v2168_v20  }
  0x87   : > { %424 = vperm.xlu1 %1940, %v2170_v21   ;;  %439 = vperm.xlu0 %1939, %v2178_v25   ;;  %vm245_vm0 = vcmp.eq.s32.totalorder %v2131_v2, %v2230_v40 }
  0x8e   : > { %v2235_v41 = vpop.permute.xlu2 %215  ;;  %v2237_v42 = vpop.permute.xlu1 %188  ;;  %436 = vperm.xlu2 %1941, %v2180_v26  }
  0x8f   : > { %433 = vperm.xlu1 %1940, %v2182_v27   ;;  %v2241_v43 = vpop.permute.xlu0 %182  ;;  %448 = vperm.xlu0 %1939, %v2190_v31   ;;  %vm251_vm8 = vcmp.eq.s32.totalorder %v2131_v2, %v2235_v41  ;;  %vm233_vm14 = vcmp.eq.s32.totalorder %v2131_v2, %v2237_v42 }
  0x90   : > { %vm229_vm15 = vcmp.eq.s32.totalorder %v2131_v2, %v2241_v43 }
  0x96   : > { %v2244_v44 = vpop.permute.xlu2 %224  ;;  %v2246_v45 = vpop.permute.xlu1 %191  ;;  %445 = vperm.xlu2 %1941, %v2192_v32  }
  0x97   : > { %3854 = vst [vmem:[#allocation12_spill] sm:$0xff] %v2246_v45  ;;  %442 = vperm.xlu1 %1940, %v2194_v33   ;;  %v2250_v46 = vpop.permute.xlu0 %185  ;;  %1943 = vset.pattern.permute.xlu0 %v2055_v47 }
  0x98   : > { %521 = vperm.xlu0 %1943, %v2158_v15  }
  0x9e   : > { %v2253_v48 = vpop.permute.xlu1 %203  ;;  %1942 = vset.pattern.permute.xlu2 %v2055_v47 }
  0x9f   : > { %451 = vperm.xlu1 %1940, %v2200_v35   ;;  %v2256_v49 = vpop.permute.xlu2 %297  ;;  %518 = vperm.xlu2 %1942, %v2146_v9   ;;  %v2259_v50 = vpop.permute.xlu0 %200 }
  0xa0   : > { %536 = vperm.xlu0 %1943, %v2170_v21  }
  0xa6   : > { %v2262_v51 = vpop.permute.xlu1 %212 }
  0xa7   : > { %1944 = vset.pattern.permute.xlu1 %v2055_v47  ;;  %v2264_v52 = vpop.permute.xlu2 %306  ;;  %527 = vperm.xlu2 %1942, %v2156_v14   ;;  %v2267_v53 = vpop.permute.xlu0 %209 }
  0xa8   : > { %3855 = vst [vmem:[#allocation13_spill] sm:$0xff] %v2264_v52  ;;  %524 = vperm.xlu1 %1944, %v2144_v8   ;;  %545 = vperm.xlu0 %1943, %v2182_v27   ;;  %v3824_v52 = vmov 6  }
  0xae   : > { %v2271_v54 = vpop.permute.xlu1 %221 }
  0xaf   : > { %v2273_v55 = vpop.permute.xlu2 %312  ;;  %533 = vperm.xlu2 %1942, %v2154_v13   ;;  %v2276_v56 = vpop.permute.xlu0 %218 }
  0xb0   : > { %530 = vperm.xlu1 %1944, %v2142_v7   ;;  %554 = vperm.xlu0 %1943, %v2194_v33  }
  0xb7   : > { %v2280_v57 = vpop.permute.xlu2 %321  ;;  %542 = vperm.xlu2 %1942, %v2166_v19   ;;  %v2283_v58 = vpop.permute.xlu0 %227 }
  0xb8   : > { %539 = vperm.xlu1 %1944, %v2168_v20   ;;  %v2286_v59 = vpop.permute.xlu1 %294  ;;  %563 = vperm.xlu0 %1943, %v2200_v35  }
  0xbf   : > { %v2289_v60 = vpop.permute.xlu2 %330  ;;  %551 = vperm.xlu2 %1942, %v2178_v25  }
  0xc0   : > { %548 = vperm.xlu1 %1944, %v2180_v26   ;;  %v2293_v61 = vpop.permute.xlu1 %303  ;;  %v2295_v62 = vpop.permute.xlu0 %300  ;;  %1947 = vset.pattern.permute.xlu0 %v2056_v63 }
  0xc1   : > { %3856 = vst [vmem:[#allocation14_spill] sm:$0xff] %v2293_v61  ;;  %636 = vperm.xlu0 %1947, %v2144_v8  }
  0xc7   : > { %v2298_v0 = vpop.permute.xlu2 %339  ;;  %560 = vperm.xlu2 %1942, %v2190_v31  }
  0xc8   : > { %557 = vperm.xlu1 %1944, %v2192_v32   ;;  %v2302_v1 = vpop.permute.xlu1 %309  ;;  %v2304_v3 = vpop.permute.xlu0 %315 }
  0xc9   : > { %3857 = vst [vmem:[#allocation15_spill] sm:$0xff] %v2302_v1  ;;  %651 = vperm.xlu0 %1947, %v2168_v20  }
  0xcf   : > { %1946 = vset.pattern.permute.xlu2 %v2056_v63 }
  0xd0   : > { %1945 = vset.pattern.permute.xlu1 %v2056_v63  ;;  %v2307_v4 = vpop.permute.xlu1 %318  ;;  %v2309_v5 = vpop.permute.xlu0 %324  ;;  %633 = vperm.xlu2 %1946, %v2158_v15  }
  0xd1   : > { %v2312_v6 = vpop.permute.xlu2 %412  ;;  %630 = vperm.xlu1 %1945, %v2146_v9   ;;  %660 = vperm.xlu0 %1947, %v2180_v26   ;;  %vm357_vm2 = vcmp.eq.s32.totalorder %v2131_v2, %v2307_v4 }
  0xd8   : > { %v2316_v10 = vpop.permute.xlu1 %327  ;;  %v2318_v11 = vpop.permute.xlu0 %333  ;;  %642 = vperm.xlu2 %1946, %v2142_v7  }
  0xd9   : > { %v2321_v12 = vpop.permute.xlu2 %418  ;;  %639 = vperm.xlu1 %1945, %v2156_v14   ;;  %669 = vperm.xlu0 %1947, %v2192_v32   ;;  %vm363_vm10 = vcmp.eq.s32.totalorder %v2131_v2, %v2316_v10 }
  0xda   : > { %3858 = vst [vmem:[#allocation16_spill] sm:$0xff] %v2321_v12 }
  0xe0   : > { %v2325_v16 = vpop.permute.xlu1 %336  ;;  %648 = vperm.xlu2 %1946, %v2170_v21  }
  0xe1   : > { %v2328_v17 = vpop.permute.xlu2 %427  ;;  %645 = vperm.xlu1 %1945, %v2154_v13   ;;  %v2331_v18 = vpop.permute.xlu0 %406  ;;  %1948 = vset.pattern.permute.xlu0 %v2057_v22 }
  0xe2   : > { %742 = vperm.xlu0 %1948, %v2146_v9  }
  0xe8   : > { %657 = vperm.xlu2 %1946, %v2182_v27  }
  0xe9   : > { %v2335_v23 = vpop.permute.xlu2 %436  ;;  %654 = vperm.xlu1 %1945, %v2166_v19   ;;  %v2338_v24 = vpop.permute.xlu1 %409 }
  0xea   : > { %v2340_v28 = vpop.permute.xlu0 %421  ;;  %757 = vperm.xlu0 %1948, %v2154_v13  }
  0xeb   : > { %3859 = vst [vmem:[#allocation17_spill] sm:$0xff] %v2340_v28 }
  0xf0   : > { %666 = vperm.xlu2 %1946, %v2194_v33  }
  0xf1   : > { %v2344_v29 = vpop.permute.xlu2 %445  ;;  %663 = vperm.xlu1 %1945, %v2178_v25   ;;  %v2347_v30 = vpop.permute.xlu1 %415 }
  0xf2   : > { %3860 = vst [vmem:[#allocation18_spill] sm:$0xff] %v2347_v30  ;;  %v431_v34 = vpop.permute.xlu0 %430  ;;  %766 = vperm.xlu0 %1948, %v2166_v19  }
  0xf3   : > { %vm469_vm4 = vcmp.eq.s32.totalorder %v2131_v2, %v431_v34 }
  0xf8   : > { %675 = vperm.xlu2 %1946, %v2200_v35  }
  0xf9   : > { %672 = vperm.xlu1 %1945, %v2190_v31   ;;  %v2352_v36 = vpop.permute.xlu1 %424  ;;  %v2354_v37 = vpop.permute.xlu2 %518 }
  0xfa   : > { %v440_v47 = vpop.permute.xlu0 %439  ;;  %775 = vperm.xlu0 %1948, %v2178_v25  }
  0xfb   : > { %vm475_vm12 = vcmp.eq.s32.totalorder %v2131_v2, %v440_v47 }
 0x100   : > { %1950 = vset.pattern.permute.xlu2 %v2057_v22 }
 0x101   : > { %1949 = vset.pattern.permute.xlu1 %v2057_v22  ;;  %v2357_v63 = vpop.permute.xlu1 %433  ;;  %748 = vperm.xlu2 %1950, %v2144_v8   ;;  %v2360_v30 = vpop.permute.xlu2 %527  ;;  %v2373_v22 = vadd.s32 128, %v2131_v2 }
 0x102   : > { %3861 = vst [vmem:[#allocation19_spill] sm:$0xff] %v2360_v30  ;;  %v2362_v61 = vpop.permute.xlu0 %448  ;;  %745 = vperm.xlu1 %1949, %v2158_v15   ;;  %784 = vperm.xlu0 %1948, %v2190_v31  }
 0x103   : > { %vm246_vm1 = vcmp.eq.s32.totalorder %v2373_v22, %v2230_v40  ;;  %vm358_vm3 = vcmp.eq.s32.totalorder %v2373_v22, %v2307_v4  ;;  %vm470_vm5 = vcmp.eq.s32.totalorder %v2373_v22, %v431_v34  ;;  %vm252_vm9 = vcmp.eq.s32.totalorder %v2373_v22, %v2235_v41 }
 0x104   : > { %vm364_vm11 = vcmp.eq.s32.totalorder %v2373_v22, %v2316_v10  ;;  %vm476_vm13 = vcmp.eq.s32.totalorder %v2373_v22, %v440_v47 }
 0x109   : > { %v2366_v45 = vpop.permute.xlu1 %442  ;;  %754 = vperm.xlu2 %1950, %v2142_v7   ;;  %v2369_v12 = vpop.permute.xlu2 %533 }
 0x10a   : > { %3862 = vst [vmem:[#allocation20_spill] sm:$0xff] %v2369_v12  ;;  %751 = vperm.xlu1 %1949, %v2156_v14   ;;  %1952 = vset.pattern.permute.xlu0 %v3824_v52  ;;  %v2376_v30 = vpop.permute.xlu0 %521  ;;  %v3836_v52 = vmov 0.0  }
 0x10b   : > { %857 = vperm.xlu0 %1952, %v2158_v15   ;;  %v277_v38 = vsel %vm245_vm0, 1.0, %v3836_v52  ;;  %v278_v15 = vsel %vm246_vm1, 1.0, %v3836_v52  ;;  %vm230_vm0 = vcmp.eq.s32.totalorder %v2373_v22, %v2241_v43 }
 0x10c   : > { %v389_v31 = vsel %vm357_vm2, 1.0, %v277_v38  ;;  %v390_v12 = vsel %vm358_vm3, 1.0, %v278_v15  ;;  %v3864_v15 = vmov 0.0   ;;  %vm257_vm3 = vcmp.eq.s32.totalorder %v2131_v2, %v2244_v44 }
 0x10d   : > { %v501_v1 = vsel %vm469_vm4, 1.0, %v389_v31  ;;  %v502_v25 = vsel %vm470_vm5, 1.0, %v390_v12  ;;  %v284_v31 = vsel %vm252_vm9, 1.0, %v3864_v15  ;;  %vm258_vm4 = vcmp.eq.s32.totalorder %v2373_v22, %v2244_v44 }
 0x10e   : > { %v396_v41 = vsel %vm364_vm11, 1.0, %v284_v31  ;;  %vm231_vm5 = vcmp.eq.s32.totalorder %v2131_v2, %v2250_v46  ;;  %v2449_v44 = vsel %vm229_vm15, 1.0, %v3864_v15  ;;  %vm370_vm9 = vcmp.eq.s32.totalorder %v2373_v22, %v2325_v16 }
 0x10f   : > { %v508_v12 = vsel %vm476_vm13, 1.0, %v396_v41  ;;  %v289_v41 = vsel %vm257_vm3, 1.0, %v3864_v15  ;;  %v263_v43 = vsel %vm231_vm5, 1.0, %v3864_v15  ;;  %vm482_vm11 = vcmp.eq.s32.totalorder %v2373_v22, %v2362_v61 }
 0x110   : > { %vm244_vm13 = vcmp.eq.s32.totalorder %v2373_v22, %v2253_v48  ;;  %vm344_vm15 = vcmp.eq.s32.totalorder %v2373_v22, %v2256_v49  ;;  %vm248_vm5 = vcmp.eq.s32.totalorder %v2373_v22, %v2267_v53 }
 0x111   : > { %v2391_v28 = vpop.permute.xlu1 %451  ;;  %763 = vperm.xlu2 %1950, %v2168_v20   ;;  %v543_v40 = vpop.permute.xlu2 %542 }
 0x112   : > { %vm581_vm6 = vcmp.eq.s32.totalorder %v2131_v2, %v543_v40  ;;  %vm582_vm7 = vcmp.eq.s32.totalorder %v2373_v22, %v543_v40  ;;  %760 = vperm.xlu1 %1949, %v2170_v21   ;;  %v2401_v52 = vpop.permute.xlu0 %536 }
 0x113   : > { %v2397_v4 = vsel %vm581_vm6, 1.0, %v501_v1  ;;  %v2399_v34 = vsel %vm582_vm7, 1.0, %v502_v25  ;;  %872 = vperm.xlu0 %1952, %v2170_v21   ;;  %v283_v25 = vsel %vm251_vm8, 1.0, %v3864_v15  ;;  %vm232_vm6 = vcmp.eq.s32.totalorder %v2373_v22, %v2250_v46 }
 0x114   : > { %3863 = vst [vmem:[#allocation21_spill] sm:$0xff] %v2399_v34  ;;  %v395_v38 = vsel %vm363_vm10, 1.0, %v283_v25  ;;  %vm234_vm7 = vcmp.eq.s32.totalorder %v2373_v22, %v2237_v42  ;;  %v2461_v46 = vsel %vm233_vm14, 1.0, %v3864_v15  ;;  %vm369_vm8 = vcmp.eq.s32.totalorder %v2131_v2, %v2325_v16 }
 0x115   : > { %v507_v10 = vsel %vm475_vm12, 1.0, %v395_v38  ;;  %v2455_v38 = vsel %vm230_vm0, 1.0, %v3864_v15  ;;  %vm481_vm10 = vcmp.eq.s32.totalorder %v2131_v2, %v2362_v61  ;;  %vm243_vm12 = vcmp.eq.s32.totalorder %v2131_v2, %v2253_v48 }
 0x116   : > { %vm343_vm14 = vcmp.eq.s32.totalorder %v2131_v2, %v2256_v49  ;;  %vm241_vm0 = vcmp.eq.s32.totalorder %v2131_v2, %v2259_v50  ;;  %v401_v16 = vsel %vm369_vm8, 1.0, %v289_v41  ;;  %vm250_vm8 = vcmp.eq.s32.totalorder %v2373_v22, %v2262_v51 }
 0x117   : > { %v2530_v42 = vsel %vm243_vm12, 1.0, %v3864_v15  ;;  %v2536_v49 = vsel %vm248_vm5, 1.0, %v3864_v15  ;;  %vm256_vm12 = vcmp.eq.s32.totalorder %v2373_v22, %v2271_v54 }
 0x119   : > { %772 = vperm.xlu2 %1950, %v2180_v26   ;;  %v552_v1 = vpop.permute.xlu2 %551 }
 0x11a   : > { %vm587_vm1 = vcmp.eq.s32.totalorder %v2131_v2, %v552_v1  ;;  %vm588_vm2 = vcmp.eq.s32.totalorder %v2373_v22, %v552_v1  ;;  %769 = vperm.xlu1 %1949, %v2182_v27   ;;  %v2426_v47 = vpop.permute.xlu1 %524  ;;  %v2436_v31 = vpop.permute.xlu0 %545  ;;  %v290_v1 = vsel %vm258_vm4, 1.0, %v3864_v15  ;;  %vm247_vm4 = vcmp.eq.s32.totalorder %v2131_v2, %v2267_v53 }
 0x11b   : > { %v2432_v40 = vsel %vm587_vm1, 1.0, %v507_v10  ;;  %v2434_v25 = vsel %vm588_vm2, 1.0, %v508_v12  ;;  %881 = vperm.xlu0 %1952, %v2182_v27   ;;  %v264_v10 = vsel %vm232_vm6, 1.0, %v3864_v15  ;;  %vm242_vm1 = vcmp.eq.s32.totalorder %v2373_v22, %v2259_v50 }
 0x11c   : > { %3865 = vst [vmem:[#allocation22_spill] sm:$0xff] %v2432_v40  ;;  %v402_v61 = vsel %vm370_vm9, 1.0, %v290_v1  ;;  %v513_v27 = vsel %vm481_vm10, 1.0, %v401_v16  ;;  %vm249_vm6 = vcmp.eq.s32.totalorder %v2131_v2, %v2262_v51  ;;  %v273_v53 = vsel %vm241_vm0, 1.0, %v3864_v15 }
 0x11d   : > { %3866 = vst [vmem:[#allocation23_spill] sm:$0xff] %v2434_v25  ;;  %v514_v21 = vsel %vm482_vm11, 1.0, %v402_v61  ;;  %v375_v61 = vsel %vm343_vm14, 1.0, %v263_v43  ;;  %v274_v51 = vsel %vm242_vm1, 1.0, %v3864_v15  ;;  %v2533_v43 = vsel %vm247_vm4, 1.0, %v3864_v15 }
 0x11e   : > { %v2544_v50 = vsel %vm244_vm13, 1.0, %v3864_v15  ;;  %vm455_vm9 = vcmp.eq.s32.totalorder %v2131_v2, %v2338_v24  ;;  %vm456_vm10 = vcmp.eq.s32.totalorder %v2373_v22, %v2338_v24  ;;  %vm255_vm11 = vcmp.eq.s32.totalorder %v2131_v2, %v2271_v54 }
 0x11f   : > { %vm567_vm13 = vcmp.eq.s32.totalorder %v2131_v2, %v2376_v30  ;;  %vm568_vm14 = vcmp.eq.s32.totalorder %v2373_v22, %v2376_v30  ;;  %vm253_vm0 = vcmp.eq.s32.totalorder %v2131_v2, %v2276_v56  ;;  %vm254_vm1 = vcmp.eq.s32.totalorder %v2373_v22, %v2276_v56 }
 0x120   : > { %v3870_v24 = vmov 6   ;;  %v487_v30 = vsel %vm455_vm9, 1.0, %v375_v61  ;;  %v287_v56 = vsel %vm255_vm11, 1.0, %v3864_v15  ;;  %vm355_vm9 = vcmp.eq.s32.totalorder %v2131_v2, %v2304_v3 }
 0x121   : > { %781 = vperm.xlu2 %1950, %v2192_v32   ;;  %v561_v12 = vpop.permute.xlu2 %560  ;;  %vm473_vm11 = vcmp.eq.s32.totalorder %v2131_v2, %v2335_v23 }
 0x122   : > { %vm593_vm2 = vcmp.eq.s32.totalorder %v2131_v2, %v561_v12  ;;  %vm594_vm3 = vcmp.eq.s32.totalorder %v2373_v22, %v561_v12  ;;  %778 = vperm.xlu1 %1949, %v2194_v33   ;;  %v2491_v25 = vpop.permute.xlu1 %530  ;;  %v2501_v16 = vpop.permute.xlu0 %554  ;;  %v282_v12 = vsel %vm250_vm8, 1.0, %v3864_v15  ;;  %vm362_vm8 = vcmp.eq.s32.totalorder %v2373_v22, %v2309_v5 }
 0x123   : > { %3867 = vst [vmem:[#allocation24_spill] sm:$0xff] %v2491_v25  ;;  %v2497_v41 = vsel %vm593_vm2, 1.0, %v513_v27  ;;  %v2499_v1 = vsel %vm594_vm3, 1.0, %v514_v21  ;;  %v266_v27 = vsel %vm234_vm7, 1.0, %v3864_v15  ;;  %890 = vperm.xlu0 %1952, %v2194_v33   ;;  %v376_v21 = vsel %vm344_vm15, 1.0, %v264_v10 }
 0x124   : > { %3868 = vst [vmem:[#allocation25_spill] sm:$0xff] %v2497_v41  ;;  %vm353_vm7 = vcmp.eq.s32.totalorder %v2131_v2, %v2273_v55  ;;  %v281_v10 = vsel %vm249_vm6, 1.0, %v3864_v15  ;;  %vm354_vm15 = vcmp.eq.s32.totalorder %v2373_v22, %v2273_v55  ;;  %vm345_vm2 = vcmp.eq.s32.totalorder %v2131_v2, %v2295_v62 }
 0x125   : > { %3869 = vst [vmem:[#allocation26_spill] sm:$0xff] %v2499_v1  ;;  %v2562_v48 = vsel %vm353_vm7, 1.0, %v273_v53  ;;  %vm346_vm3 = vcmp.eq.s32.totalorder %v2373_v22, %v2295_v62  ;;  %v488_v33 = vsel %vm456_vm10, 1.0, %v376_v21  ;;  %v599_v41 = vsel %vm567_vm13, 1.0, %v487_v30 }
 0x126   : > { %v600_v40 = vsel %vm568_vm14, 1.0, %v488_v33  ;;  %v2584_v61 = vsel %vm354_vm15, 1.0, %v274_v51  ;;  %vm361_vm6 = vcmp.eq.s32.totalorder %v2131_v2, %v2309_v5  ;;  %v2597_v33 = vsel %vm253_vm0, 1.0, %v3864_v15 }
 0x127   : > { %v2603_v55 = vsel %vm254_vm1, 1.0, %v3864_v15  ;;  %vm457_vm7 = vcmp.eq.s32.totalorder %v2131_v2, %v2312_v6  ;;  %v288_v5 = vsel %vm256_vm12, 1.0, %v3864_v15  ;;  %vm356_vm10 = vcmp.eq.s32.totalorder %v2373_v22, %v2304_v3 }
 0x128   : > { %vm458_vm13 = vcmp.eq.s32.totalorder %v2373_v22, %v2312_v6  ;;  %v394_v62 = vsel %vm362_vm8, 1.0, %v282_v12  ;;  %vm474_vm14 = vcmp.eq.s32.totalorder %v2373_v22, %v2335_v23  ;;  %vm367_vm12 = vcmp.eq.s32.totalorder %v2131_v2, %v2318_v11 }
 0x129   : > { %1951 = vset.pattern.permute.xlu2 %v3870_v24  ;;  %vm368_vm15 = vcmp.eq.s32.totalorder %v2373_v22, %v2318_v11  ;;  %vm467_vm0 = vcmp.eq.s32.totalorder %v2131_v2, %v2328_v17  ;;  %vm468_vm1 = vcmp.eq.s32.totalorder %v2373_v22, %v2328_v17  ;;  %v506_v51 = vsel %vm474_vm14, 1.0, %v394_v62 }
 0x12a   : > { %787 = vperm.xlu1 %1949, %v2200_v35   ;;  %v2574_v53 = vpop.permute.xlu1 %539  ;;  %854 = vperm.xlu2 %1951, %v2146_v9   ;;  %v634_v1 = vpop.permute.xlu2 %633  ;;  %vm480_vm8 = vcmp.eq.s32.totalorder %v2373_v22, %v2344_v29  ;;  %v387_v62 = vsel %vm355_vm9, 1.0, %v2530_v42 }
 0x12b   : > { %v2577_v25 = vpop.permute.xlu0 %563  ;;  %vm679_vm4 = vcmp.eq.s32.totalorder %v2131_v2, %v634_v1  ;;  %vm680_vm5 = vcmp.eq.s32.totalorder %v2373_v22, %v634_v1  ;;  %899 = vperm.xlu0 %1952, %v2200_v35   ;;  %v499_v42 = vsel %vm467_vm0, 1.0, %v387_v62  ;;  %vm579_vm9 = vcmp.eq.s32.totalorder %v2131_v2, %v2574_v53 }
 0x12c   : > { %v2588_v21 = vsel %vm679_vm4, 1.0, %v599_v41  ;;  %v2590_v34 = vsel %vm680_vm5, 1.0, %v600_v40  ;;  %v377_v40 = vsel %vm345_vm2, 1.0, %v2461_v46  ;;  %v378_v41 = vsel %vm346_vm3, 1.0, %v266_v27 }
 0x12d   : > { %v393_v46 = vsel %vm361_vm6, 1.0, %v281_v10  ;;  %v489_v1 = vsel %vm457_vm7, 1.0, %v377_v40  ;;  %v490_v54 = vsel %vm458_vm13, 1.0, %v378_v41  ;;  %vm569_vm2 = vcmp.eq.s32.totalorder %v2131_v2, %v2426_v47 }
 0x12e   : > { %vm570_vm3 = vcmp.eq.s32.totalorder %v2373_v22, %v2426_v47  ;;  %v505_v27 = vsel %vm473_vm11, 1.0, %v393_v46  ;;  %vm479_vm6 = vcmp.eq.s32.totalorder %v2131_v2, %v2344_v29  ;;  %vm341_vm7 = vcmp.eq.s32.totalorder %v2131_v2, %v2286_v59 }
 0x12f   : > { %v601_v40 = vsel %vm569_vm2, 1.0, %v489_v1  ;;  %v602_v41 = vsel %vm570_vm3, 1.0, %v490_v54  ;;  %vm465_vm13 = vcmp.eq.s32.totalorder %v2131_v2, %v2352_v36  ;;  %vm466_vm2 = vcmp.eq.s32.totalorder %v2373_v22, %v2352_v36 }
 0x130   : > { %v388_v1 = vsel %vm356_vm10, 1.0, %v2544_v50  ;;  %vm577_vm3 = vcmp.eq.s32.totalorder %v2131_v2, %v2401_v52  ;;  %v399_v36 = vsel %vm367_vm12, 1.0, %v287_v56  ;;  %v400_v54 = vsel %vm368_vm15, 1.0, %v288_v5 }
 0x131   : > { %v500_v3 = vsel %vm468_vm1, 1.0, %v388_v1  ;;  %v497_v50 = vsel %vm465_vm13, 1.0, %v2562_v48  ;;  %v511_v56 = vsel %vm479_vm6, 1.0, %v399_v36  ;;  %v512_v11 = vsel %vm480_vm8, 1.0, %v400_v54 }
 0x132   : > { %1953 = vset.pattern.permute.xlu1 %v3870_v24  ;;  %v549_v6 = vpop.permute.xlu1 %548  ;;  %863 = vperm.xlu2 %1951, %v2156_v14   ;;  %v2648_v23 = vpop.permute.xlu2 %642  ;;  %v2060_v24 = vmov 7   ;;  %v609_v5 = vsel %vm577_vm3, 1.0, %v497_v50  ;;  %vm580_vm10 = vcmp.eq.s32.totalorder %v2373_v22, %v2574_v53  ;;  %vm239_vm6 = vcmp.eq.s32.totalorder %v2131_v2, %v2225_v39 }
 0x133   : > { %vm585_vm4 = vcmp.eq.s32.totalorder %v2131_v2, %v549_v6  ;;  %vm586_vm5 = vcmp.eq.s32.totalorder %v2373_v22, %v549_v6  ;;  %860 = vperm.xlu1 %1953, %v2144_v8   ;;  %1956 = vset.pattern.permute.xlu0 %v2060_v24  ;;  %v637_v30 = vpop.permute.xlu0 %636  ;;  %vm565_vm3 = vcmp.eq.s32.totalorder %v2131_v2, %v2354_v37 }
 0x134   : > { %v2657_v10 = vsel %vm585_vm4, 1.0, %v505_v27  ;;  %v2659_v12 = vsel %vm586_vm5, 1.0, %v506_v51  ;;  %vm681_vm11 = vcmp.eq.s32.totalorder %v2131_v2, %v637_v30  ;;  %vm682_vm14 = vcmp.eq.s32.totalorder %v2373_v22, %v637_v30  ;;  %972 = vperm.xlu0 %1956, %v2144_v8  }
 0x135   : > { %vm359_vm4 = vcmp.eq.s32.totalorder %v2131_v2, %v2280_v57  ;;  %v2683_v47 = vsel %vm681_vm11, 1.0, %v601_v40  ;;  %v2685_v46 = vsel %vm682_vm14, 1.0, %v602_v41  ;;  %vm578_vm5 = vcmp.eq.s32.totalorder %v2373_v22, %v2401_v52 }
 0x136   : > { %v498_v52 = vsel %vm466_vm2, 1.0, %v2584_v61  ;;  %v611_v40 = vsel %vm579_vm9, 1.0, %v499_v42  ;;  %v612_v41 = vsel %vm580_vm10, 1.0, %v500_v3  ;;  %vm240_vm11 = vcmp.eq.s32.totalorder %v2373_v22, %v2225_v39 }
 0x137   : > { %v610_v6 = vsel %vm578_vm5, 1.0, %v498_v52  ;;  %vm259_vm14 = vcmp.eq.s32.totalorder %v2131_v2, %v2283_v58  ;;  %vm453_vm5 = vcmp.eq.s32.totalorder %v2131_v2, %v2331_v18  ;;  %vm454_vm2 = vcmp.eq.s32.totalorder %v2373_v22, %v2331_v18 }
 0x138   : > { %vm566_vm9 = vcmp.eq.s32.totalorder %v2373_v22, %v2354_v37  ;;  %vm471_vm10 = vcmp.eq.s32.totalorder %v2131_v2, %v2357_v63  ;;  %v373_v18 = vsel %vm341_vm7, 1.0, %v2449_v44  ;;  %vm3872_vm7 = vcmp.eq.s32.totalorder %v2373_v22, %v2280_v57 }
 0x139   : > { %v392_v44 = vsel %vm3872_vm7, 1.0, %v2536_v49  ;;  %v485_v36 = vsel %vm453_vm5, 1.0, %v373_v18  ;;  %vm590_vm7 = vcmp.eq.s32.totalorder %v2373_v22, %v2501_v16 }
 0x13a   : > { %v558_v17 = vpop.permute.xlu1 %557  ;;  %869 = vperm.xlu2 %1951, %v2154_v13   ;;  %v649_v48 = vpop.permute.xlu2 %648 }
 0x13b   : > { %vm591_vm12 = vcmp.eq.s32.totalorder %v2131_v2, %v558_v17  ;;  %vm592_vm15 = vcmp.eq.s32.totalorder %v2373_v22, %v558_v17  ;;  %vm689_vm0 = vcmp.eq.s32.totalorder %v2131_v2, %v649_v48  ;;  %vm690_vm1 = vcmp.eq.s32.totalorder %v2373_v22, %v649_v48  ;;  %866 = vperm.xlu1 %1953, %v2142_v7   ;;  %v652_v30 = vpop.permute.xlu0 %651 }
 0x13c   : > { %v2729_v29 = vsel %vm591_vm12, 1.0, %v511_v56  ;;  %v2731_v61 = vsel %vm592_vm15, 1.0, %v512_v11  ;;  %v2733_v27 = vsel %vm689_vm0, 1.0, %v609_v5  ;;  %v2735_v51 = vsel %vm690_vm1, 1.0, %v610_v6  ;;  %987 = vperm.xlu0 %1956, %v2168_v20  }
 0x13d   : > { %vm691_vm8 = vcmp.eq.s32.totalorder %v2131_v2, %v652_v30  ;;  %vm692_vm13 = vcmp.eq.s32.totalorder %v2373_v22, %v652_v30  ;;  %vm472_vm12 = vcmp.eq.s32.totalorder %v2373_v22, %v2357_v63  ;;  %vm3871_vm15 = vcmp.eq.s32.totalorder %v2373_v22, %v2286_v59 }
 0x13e   : > { %v2756_v53 = vsel %vm691_vm8, 1.0, %v611_v40  ;;  %v2758_v62 = vsel %vm692_vm13, 1.0, %v612_v41  ;;  %v374_v1 = vsel %vm3871_vm15, 1.0, %v2455_v38  ;;  %vm583_vm0 = vcmp.eq.s32.totalorder %v2131_v2, %v2436_v31  ;;  %v3873_v40 = vld [vmem:[#allocation7_spill] sm:$0xff] }
 0x13f   : > { %vm584_vm1 = vcmp.eq.s32.totalorder %v2373_v22, %v2436_v31  ;;  %v391_v63 = vsel %vm359_vm4, 1.0, %v2533_v43  ;;  %v486_v54 = vsel %vm454_vm2, 1.0, %v374_v1  ;;  %v504_v38 = vsel %vm472_vm12, 1.0, %v392_v44  ;;  %v3875_v44 = vld [vmem:[#allocation17_spill] sm:$0xff] }
 0x140   : > { %v503_v59 = vsel %vm471_vm10, 1.0, %v391_v63  ;;  %v597_v31 = vsel %vm565_vm3, 1.0, %v485_v36  ;;  %v598_v43 = vsel %vm566_vm9, 1.0, %v486_v54  ;;  %v616_v50 = vsel %vm584_vm1, 1.0, %v504_v38  ;;  %v3876_v36 = vld [vmem:[#allocation20_spill] sm:$0xff] }
 0x141   : > { %v615_v3 = vsel %vm583_vm0, 1.0, %v503_v59  ;;  %vm365_vm9 = vcmp.eq.s32.totalorder %v2131_v2, %v2289_v60  ;;  %vm366_vm10 = vcmp.eq.s32.totalorder %v2373_v22, %v2289_v60  ;;  %vm260_vm12 = vcmp.eq.s32.totalorder %v2373_v22, %v2283_v58 }
 0x142   : > { %878 = vperm.xlu2 %1951, %v2166_v19   ;;  %v658_v42 = vpop.permute.xlu2 %657  ;;  %vm477_vm15 = vcmp.eq.s32.totalorder %v2131_v2, %v2366_v45  ;;  %vm478_vm0 = vcmp.eq.s32.totalorder %v2373_v22, %v2366_v45  ;;  %v271_v60 = vsel %vm239_vm6, 1.0, %v3864_v15  ;;  %vm589_vm1 = vcmp.eq.s32.totalorder %v2131_v2, %v2501_v16 }
 0x143   : > { %vm695_vm4 = vcmp.eq.s32.totalorder %v2131_v2, %v658_v42  ;;  %vm696_vm8 = vcmp.eq.s32.totalorder %v2373_v22, %v658_v42  ;;  %875 = vperm.xlu1 %1953, %v2168_v20   ;;  %v631_v57 = vpop.permute.xlu1 %630  ;;  %v661_v56 = vpop.permute.xlu0 %660  ;;  %v291_v45 = vsel %vm259_vm14, 1.0, %v3864_v15  ;;  %v398_v17 = vsel %vm366_vm10, 1.0, %v2603_v55 }
 0x144   : > { %v2798_v49 = vsel %vm695_vm4, 1.0, %v615_v3  ;;  %v2800_v52 = vsel %vm696_vm8, 1.0, %v616_v50  ;;  %vm677_vm13 = vcmp.eq.s32.totalorder %v2131_v2, %v631_v57  ;;  %vm678_vm5 = vcmp.eq.s32.totalorder %v2373_v22, %v631_v57  ;;  %996 = vperm.xlu0 %1956, %v2180_v26   ;;  %v3877_v57 = vld [vmem:[#allocation9_spill] sm:$0xff] }
 0x145   : > { %v2804_v37 = vsel %vm677_vm13, 1.0, %v597_v31  ;;  %v2806_v11 = vsel %vm678_vm5, 1.0, %v598_v43  ;;  %vm697_vm2 = vcmp.eq.s32.totalorder %v2131_v2, %v661_v56  ;;  %vm698_vm3 = vcmp.eq.s32.totalorder %v2373_v22, %v661_v56 }
 0x146   : > { %v2816_v5 = vsel %vm697_vm2, 1.0, %v2657_v10  ;;  %v2819_v6 = vsel %vm698_vm3, 1.0, %v2659_v12  ;;  %v272_v10 = vsel %vm240_vm11, 1.0, %v3864_v15  ;;  %v397_v12 = vsel %vm365_vm9, 1.0, %v2597_v33  ;;  %v3874_v33 = vld [vmem:[#allocation15_spill] sm:$0xff] }
 0x147   : > { %v292_v48 = vsel %vm260_vm12, 1.0, %v3864_v15  ;;  %vm371_vm6 = vcmp.eq.s32.totalorder %v2131_v2, %v2298_v0  ;;  %v509_v16 = vsel %vm477_vm15, 1.0, %v397_v12  ;;  %v510_v30 = vsel %vm478_vm0, 1.0, %v398_v17 }
 0x148   : > { %v621_v41 = vsel %vm589_vm1, 1.0, %v509_v16  ;;  %v622_v18 = vsel %vm590_vm7, 1.0, %v510_v30  ;;  %vm372_vm4 = vcmp.eq.s32.totalorder %v2373_v22, %v2298_v0  ;;  %vm351_vm8 = vcmp.eq.s32.totalorder %v2131_v2, %v3874_v33 }
 0x149   : > { %vm352_vm13 = vcmp.eq.s32.totalorder %v2373_v22, %v3874_v33  ;;  %vm463_vm5 = vcmp.eq.s32.totalorder %v2131_v2, %v3875_v44  ;;  %vm464_vm9 = vcmp.eq.s32.totalorder %v2373_v22, %v3875_v44  ;;  %vm575_vm10 = vcmp.eq.s32.totalorder %v2131_v2, %v3876_v36  ;;  %v3879_v44 = vld [vmem:[#allocation13_spill] sm:$0xff] }
 0x14a   : > { %887 = vperm.xlu2 %1951, %v3873_v40   ;;  %v667_v39 = vpop.permute.xlu2 %666  ;;  %v383_v38 = vsel %vm351_vm8, 1.0, %v271_v60  ;;  %vm576_vm12 = vcmp.eq.s32.totalorder %v2373_v22, %v3876_v36  ;;  %vm483_vm15 = vcmp.eq.s32.totalorder %v2131_v2, %v2391_v28  ;;  %vm484_vm0 = vcmp.eq.s32.totalorder %v2373_v22, %v2391_v28 }
 0x14b   : > { %vm701_vm11 = vcmp.eq.s32.totalorder %v2131_v2, %v667_v39  ;;  %vm702_vm14 = vcmp.eq.s32.totalorder %v2373_v22, %v667_v39  ;;  %884 = vperm.xlu1 %1953, %v2180_v26   ;;  %v2852_v58 = vpop.permute.xlu1 %639  ;;  %v670_v63 = vpop.permute.xlu0 %669  ;;  %v384_v42 = vsel %vm352_vm13, 1.0, %v272_v10  ;;  %v495_v31 = vsel %vm463_vm5, 1.0, %v383_v38 }
 0x14c   : > { %v2858_v55 = vsel %vm701_vm11, 1.0, %v621_v41  ;;  %v2860_v1 = vsel %vm702_vm14, 1.0, %v622_v18  ;;  %vm703_vm2 = vcmp.eq.s32.totalorder %v2131_v2, %v670_v63  ;;  %vm704_vm3 = vcmp.eq.s32.totalorder %v2373_v22, %v670_v63  ;;  %1005 = vperm.xlu0 %1956, %v2192_v32   ;;  %v3878_v18 = vld [vmem:[#allocation11_spill] sm:$0xff] }
 0x14d   : > { %v2874_v54 = vsel %vm703_vm2, 1.0, %v2729_v29  ;;  %v2877_v59 = vsel %vm704_vm3, 1.0, %v2731_v61  ;;  %vm595_vm1 = vcmp.eq.s32.totalorder %v2131_v2, %v2577_v25  ;;  %vm596_vm7 = vcmp.eq.s32.totalorder %v2373_v22, %v2577_v25 }
 0x14e   : > { %v403_v29 = vsel %vm371_vm6, 1.0, %v291_v45  ;;  %v404_v61 = vsel %vm372_vm4, 1.0, %v292_v48  ;;  %v496_v43 = vsel %vm464_vm9, 1.0, %v384_v42  ;;  %v607_v3 = vsel %vm575_vm10, 1.0, %v495_v31  ;;  %v3881_v42 = vld [vmem:[#allocation21_spill] sm:$0xff] }
 0x14f   : > { %v515_v50 = vsel %vm483_vm15, 1.0, %v403_v29  ;;  %v516_v28 = vsel %vm484_vm0, 1.0, %v404_v61  ;;  %v608_v60 = vsel %vm576_vm12, 1.0, %v496_v43  ;;  %v2061_v16 = vmov 8   ;;  %v3882_v43 = vld [vmem:[#allocation16_spill] sm:$0xff] }
 0x150   : > { %v627_v10 = vsel %vm595_vm1, 1.0, %v515_v50  ;;  %v628_v12 = vsel %vm596_vm7, 1.0, %v516_v28  ;;  %vm237_vm5 = vcmp.eq.s32.totalorder %v2131_v2, %v3878_v18  ;;  %vm238_vm2 = vcmp.eq.s32.totalorder %v2373_v22, %v3878_v18  ;;  %v3885_v18 = vld [vmem:[#allocation23_spill] sm:$0xff] }
 0x151   : > { %v269_v33 = vsel %vm237_vm5, 1.0, %v3864_v15  ;;  %v270_v63 = vsel %vm238_vm2, 1.0, %v3864_v15  ;;  %vm349_vm3 = vcmp.eq.s32.totalorder %v2131_v2, %v3879_v44  ;;  %vm350_vm9 = vcmp.eq.s32.totalorder %v2373_v22, %v3879_v44 }
 0x152   : > { %896 = vperm.xlu2 %1951, %v3877_v57   ;;  %v676_v56 = vpop.permute.xlu2 %675  ;;  %vm461_vm1 = vcmp.eq.s32.totalorder %v2131_v2, %v3882_v43  ;;  %vm462_vm7 = vcmp.eq.s32.totalorder %v2373_v22, %v3882_v43  ;;  %v382_v50 = vsel %vm350_vm9, 1.0, %v270_v63  ;;  %v3886_v43 = vld [vmem:[#allocation6_spill] sm:$0xff] }
 0x153   : > { %vm707_vm11 = vcmp.eq.s32.totalorder %v2131_v2, %v676_v56  ;;  %vm708_vm14 = vcmp.eq.s32.totalorder %v2373_v22, %v676_v56  ;;  %893 = vperm.xlu1 %1953, %v2192_v32   ;;  %v646_v25 = vpop.permute.xlu1 %645  ;;  %v494_v56 = vsel %vm462_vm7, 1.0, %v382_v50 }
 0x154   : > { %v2899_v45 = vsel %vm707_vm11, 1.0, %v627_v10  ;;  %v2901_v0 = vsel %vm708_vm14, 1.0, %v628_v12  ;;  %vm687_vm6 = vcmp.eq.s32.totalorder %v2131_v2, %v646_v25  ;;  %vm688_vm4 = vcmp.eq.s32.totalorder %v2373_v22, %v646_v25  ;;  %1957 = vset.pattern.permute.xlu0 %v2061_v16  ;;  %v743_v30 = vpop.permute.xlu0 %742 }
 0x155   : > { %v719_v17 = vsel %vm687_vm6, 1.0, %v607_v3  ;;  %v720_v48 = vsel %vm688_vm4, 1.0, %v608_v60  ;;  %vm789_vm8 = vcmp.eq.s32.totalorder %v2131_v2, %v743_v30  ;;  %vm790_vm13 = vcmp.eq.s32.totalorder %v2373_v22, %v743_v30  ;;  %1078 = vperm.xlu0 %1957, %v2146_v9  }
 0x156   : > { %v2910_v39 = vsel %vm789_vm8, 1.0, %v2804_v37  ;;  %v2913_v41 = vsel %vm790_vm13, 1.0, %v2806_v11  ;;  %v3880_v11 = vld [vmem:[#allocation5_spill] sm:$0xff]  ;;  %v381_v3 = vsel %vm349_vm3, 1.0, %v269_v33  ;;  %vm685_vm8 = vcmp.eq.s32.totalorder %v2131_v2, %v2648_v23 }
 0x157   : > { %vm686_vm13 = vcmp.eq.s32.totalorder %v2373_v22, %v2648_v23  ;;  %v493_v28 = vsel %vm461_vm1, 1.0, %v381_v3  ;;  %v3884_v23 = vld [vmem:[#allocation22_spill] sm:$0xff]  ;;  %v3887_v3 = vld [vmem:[#allocation25_spill] sm:$0xff] }
 0x15a   : > { %1955 = vset.pattern.permute.xlu2 %v2060_v24 }
 0x15b   : > { %1954 = vset.pattern.permute.xlu1 %v2060_v24  ;;  %v655_v37 = vpop.permute.xlu1 %654  ;;  %969 = vperm.xlu2 %1955, %v3880_v11   ;;  %v749_v36 = vpop.permute.xlu2 %748 }
 0x15c   : > { %vm693_vm10 = vcmp.eq.s32.totalorder %v2131_v2, %v655_v37  ;;  %vm694_vm12 = vcmp.eq.s32.totalorder %v2373_v22, %v655_v37  ;;  %vm793_vm15 = vcmp.eq.s32.totalorder %v2131_v2, %v749_v36  ;;  %vm794_vm0 = vcmp.eq.s32.totalorder %v2373_v22, %v749_v36  ;;  %966 = vperm.xlu1 %1954, %v2146_v9   ;;  %v758_v61 = vpop.permute.xlu0 %757 }
 0x15d   : > { %v725_v38 = vsel %vm693_vm10, 1.0, %v2397_v4  ;;  %v726_v31 = vsel %vm694_vm12, 1.0, %v3881_v42  ;;  %v2936_v24 = vsel %vm793_vm15, 1.0, %v2683_v47  ;;  %v2939_v29 = vsel %vm794_vm0, 1.0, %v2685_v46  ;;  %1093 = vperm.xlu0 %1957, %v2154_v13   ;;  %v3883_v4 = vld [vmem:[#allocation24_spill] sm:$0xff] }
 0x15e   : > { %vm799_vm11 = vcmp.eq.s32.totalorder %v2131_v2, %v758_v61  ;;  %vm800_vm14 = vcmp.eq.s32.totalorder %v2373_v22, %v758_v61  ;;  %vm573_vm6 = vcmp.eq.s32.totalorder %v2131_v2, %v3883_v4  ;;  %vm574_vm4 = vcmp.eq.s32.totalorder %v2373_v22, %v3883_v4 }
 0x15f   : > { %v2952_v47 = vsel %vm799_vm11, 1.0, %v719_v17  ;;  %v2954_v46 = vsel %vm800_vm14, 1.0, %v720_v48  ;;  %v605_v60 = vsel %vm573_vm6, 1.0, %v493_v28  ;;  %v606_v10 = vsel %vm574_vm4, 1.0, %v494_v56 }
 0x160   : > { %v717_v12 = vsel %vm685_vm8, 1.0, %v605_v60  ;;  %v718_v25 = vsel %vm686_vm13, 1.0, %v606_v10 }
 0x163   : > { %v664_v17 = vpop.permute.xlu1 %663  ;;  %978 = vperm.xlu2 %1955, %v2142_v7   ;;  %v755_v48 = vpop.permute.xlu2 %754 }
 0x164   : > { %vm699_vm5 = vcmp.eq.s32.totalorder %v2131_v2, %v664_v17  ;;  %vm700_vm2 = vcmp.eq.s32.totalorder %v2373_v22, %v664_v17  ;;  %vm797_vm3 = vcmp.eq.s32.totalorder %v2131_v2, %v755_v48  ;;  %vm798_vm9 = vcmp.eq.s32.totalorder %v2373_v22, %v755_v48  ;;  %975 = vperm.xlu1 %1954, %v2156_v14   ;;  %v767_v37 = vpop.permute.xlu0 %766  ;;  %v3891_v17 = vld [vmem:[#allocation14_spill] sm:$0xff] }
 0x165   : > { %v731_v30 = vsel %vm699_vm5, 1.0, %v3884_v23  ;;  %v732_v33 = vsel %vm700_vm2, 1.0, %v3885_v18  ;;  %v2974_v63 = vsel %vm797_vm3, 1.0, %v717_v12  ;;  %v2976_v44 = vsel %vm798_vm9, 1.0, %v718_v25  ;;  %1102 = vperm.xlu0 %1957, %v2166_v19   ;;  %v3889_v25 = vld [vmem:[#allocation12_spill] sm:$0xff] }
 0x166   : > { %vm805_vm10 = vcmp.eq.s32.totalorder %v2131_v2, %v767_v37  ;;  %vm806_vm12 = vcmp.eq.s32.totalorder %v2373_v22, %v767_v37  ;;  %vm235_vm6 = vcmp.eq.s32.totalorder %v2131_v2, %v3889_v25  ;;  %vm236_vm4 = vcmp.eq.s32.totalorder %v2373_v22, %v3889_v25  ;;  %v3894_v25 = vld [vmem:[#allocation10_spill] sm:$0xff] }
 0x167   : > { %v2981_v36 = vsel %vm805_vm10, 1.0, %v725_v38  ;;  %v2983_v42 = vsel %vm806_vm12, 1.0, %v726_v31  ;;  %v3888_v38 = vld [vmem:[#allocation26_spill] sm:$0xff]  ;;  %vm347_vm8 = vcmp.eq.s32.totalorder %v2131_v2, %v3891_v17  ;;  %vm348_vm13 = vcmp.eq.s32.totalorder %v2373_v22, %v3891_v17 }
 0x16b   : > { %v673_v61 = vpop.permute.xlu1 %672  ;;  %984 = vperm.xlu2 %1955, %v3886_v43   ;;  %v764_v4 = vpop.permute.xlu2 %763 }
 0x16c   : > { %vm705_vm15 = vcmp.eq.s32.totalorder %v2131_v2, %v673_v61  ;;  %vm706_vm0 = vcmp.eq.s32.totalorder %v2373_v22, %v673_v61  ;;  %vm803_vm1 = vcmp.eq.s32.totalorder %v2131_v2, %v764_v4  ;;  %vm804_vm7 = vcmp.eq.s32.totalorder %v2373_v22, %v764_v4  ;;  %981 = vperm.xlu1 %1954, %v2154_v13   ;;  %v776_v60 = vpop.permute.xlu0 %775  ;;  %v3893_v4 = vld [vmem:[#allocation19_spill] sm:$0xff] }
 0x16d   : > { %v737_v50 = vsel %vm705_vm15, 1.0, %v3887_v3  ;;  %v738_v28 = vsel %vm706_vm0, 1.0, %v3888_v38  ;;  %v2994_v31 = vsel %vm803_vm1, 1.0, %v2756_v53  ;;  %v2997_v56 = vsel %vm804_vm7, 1.0, %v2758_v62  ;;  %1111 = vperm.xlu0 %1957, %v3873_v40   ;;  %v3890_v53 = vld [vmem:[#allocation8_spill] sm:$0xff] }
 0x16e   : > { %vm811_vm11 = vcmp.eq.s32.totalorder %v2131_v2, %v776_v60  ;;  %vm812_vm14 = vcmp.eq.s32.totalorder %v2373_v22, %v776_v60  ;;  %vm571_vm1 = vcmp.eq.s32.totalorder %v2131_v2, %v3893_v4  ;;  %vm572_vm7 = vcmp.eq.s32.totalorder %v2373_v22, %v3893_v4 }
 0x16f   : > { %v3002_v10 = vsel %vm811_vm11, 1.0, %v731_v30  ;;  %v3004_v12 = vsel %vm812_vm14, 1.0, %v732_v33  ;;  %vm683_vm11 = vcmp.eq.s32.totalorder %v2131_v2, %v2852_v58  ;;  %vm684_vm14 = vcmp.eq.s32.totalorder %v2373_v22, %v2852_v58 }
 0x170   : > { %v2062_v4 = vmov 9  }
 0x173   : > { %993 = vperm.xlu2 %1955, %v3890_v53   ;;  %v773_v62 = vpop.permute.xlu2 %772 }
 0x174   : > { %vm809_vm5 = vcmp.eq.s32.totalorder %v2131_v2, %v773_v62  ;;  %vm810_vm2 = vcmp.eq.s32.totalorder %v2373_v22, %v773_v62  ;;  %990 = vperm.xlu1 %1954, %v2166_v19   ;;  %v746_v48 = vpop.permute.xlu1 %745  ;;  %v785_v18 = vpop.permute.xlu0 %784 }
 0x175   : > { %v3019_v23 = vsel %vm809_vm5, 1.0, %v2816_v5  ;;  %v3022_v30 = vsel %vm810_vm2, 1.0, %v2819_v6  ;;  %vm791_vm3 = vcmp.eq.s32.totalorder %v2131_v2, %v746_v48  ;;  %vm792_vm9 = vcmp.eq.s32.totalorder %v2373_v22, %v746_v48  ;;  %1120 = vperm.xlu0 %1957, %v3877_v57   ;;  %v3892_v5 = vld [vmem:[#allocation18_spill] sm:$0xff] }
 0x176   : > { %v823_v33 = vsel %vm791_vm3, 1.0, %v2588_v21  ;;  %v824_v37 = vsel %vm792_vm9, 1.0, %v2590_v34  ;;  %vm817_vm10 = vcmp.eq.s32.totalorder %v2131_v2, %v785_v18  ;;  %vm818_vm12 = vcmp.eq.s32.totalorder %v2373_v22, %v785_v18 }
 0x177   : > { %vm459_vm15 = vcmp.eq.s32.totalorder %v2131_v2, %v3892_v5  ;;  %vm460_vm0 = vcmp.eq.s32.totalorder %v2373_v22, %v3892_v5  ;;  %v3035_v6 = vsel %vm817_vm10, 1.0, %v737_v50  ;;  %v3037_v61 = vsel %vm818_vm12, 1.0, %v738_v28 }
 0x178   : > { %v267_v34 = vsel %vm235_vm6, 1.0, %v3864_v15  ;;  %v268_v21 = vsel %vm236_vm4, 1.0, %v3864_v15 }
 0x179   : > { %v379_v3 = vsel %vm347_vm8, 1.0, %v267_v34  ;;  %v380_v50 = vsel %vm348_vm13, 1.0, %v268_v21 }
 0x17a   : > { %v491_v15 = vsel %vm459_vm15, 1.0, %v379_v3  ;;  %v492_v38 = vsel %vm460_vm0, 1.0, %v380_v50 }
 0x17b   : > { %v603_v28 = vsel %vm571_vm1, 1.0, %v491_v15  ;;  %v604_v60 = vsel %vm572_vm7, 1.0, %v492_v38  ;;  %1002 = vperm.xlu2 %1955, %v3894_v25   ;;  %v782_v62 = vpop.permute.xlu2 %781 }
 0x17c   : > { %v715_v48 = vsel %vm683_vm11, 1.0, %v603_v28  ;;  %v716_v18 = vsel %vm684_vm14, 1.0, %v604_v60  ;;  %vm815_vm6 = vcmp.eq.s32.totalorder %v2131_v2, %v782_v62  ;;  %vm816_vm4 = vcmp.eq.s32.totalorder %v2373_v22, %v782_v62  ;;  %999 = vperm.xlu1 %1954, %v3873_v40   ;;  %v752_v17 = vpop.permute.xlu1 %751 }
 0x17d   : > { %v3066_v5 = vsel %vm815_vm6, 1.0, %v2874_v54  ;;  %v3069_v58 = vsel %vm816_vm4, 1.0, %v2877_v59  ;;  %vm795_vm8 = vcmp.eq.s32.totalorder %v2131_v2, %v752_v17  ;;  %vm796_vm13 = vcmp.eq.s32.totalorder %v2373_v22, %v752_v17  ;;  %1961 = vset.pattern.permute.xlu0 %v2062_v4  ;;  %v858_v3 = vpop.permute.xlu0 %857 }
 0x17e   : > { %v827_v34 = vsel %vm795_vm8, 1.0, %v715_v48  ;;  %v828_v21 = vsel %vm796_vm13, 1.0, %v716_v18  ;;  %vm903_vm5 = vcmp.eq.s32.totalorder %v2131_v2, %v858_v3  ;;  %vm904_vm2 = vcmp.eq.s32.totalorder %v2373_v22, %v858_v3  ;;  %1193 = vperm.xlu0 %1961, %v3880_v11  }
 0x17f   : > { %v3077_v54 = vsel %vm903_vm5, 1.0, %v823_v33  ;;  %v3079_v59 = vsel %vm904_vm2, 1.0, %v824_v37  ;;  %v2063_v62 = vmov 11  }
 0x183   : > { %1011 = vperm.xlu2 %1955, %v2200_v35  }
 0x184   : > { %1008 = vperm.xlu1 %1954, %v3877_v57   ;;  %v761_v50 = vpop.permute.xlu1 %760  ;;  %v855_v15 = vpop.permute.xlu2 %854 }
 0x185   : > { %vm801_vm3 = vcmp.eq.s32.totalorder %v2131_v2, %v761_v50  ;;  %vm802_vm9 = vcmp.eq.s32.totalorder %v2373_v22, %v761_v50  ;;  %vm901_vm10 = vcmp.eq.s32.totalorder %v2131_v2, %v855_v15  ;;  %vm902_vm12 = vcmp.eq.s32.totalorder %v2373_v22, %v855_v15  ;;  %v873_v60 = vpop.permute.xlu0 %872 }
 0x186   : > { %v833_v38 = vsel %vm801_vm3, 1.0, %v2733_v27  ;;  %v834_v33 = vsel %vm802_vm9, 1.0, %v2735_v51  ;;  %v3090_v37 = vsel %vm901_vm10, 1.0, %v2910_v39  ;;  %v3093_v28 = vsel %vm902_vm12, 1.0, %v2913_v41  ;;  %1964 = vset.pattern.permute.xlu0 %v2063_v62 }
 0x187   : > { %vm913_vm15 = vcmp.eq.s32.totalorder %v2131_v2, %v873_v60  ;;  %vm914_vm0 = vcmp.eq.s32.totalorder %v2373_v22, %v873_v60  ;;  %1414 = vperm.xlu0 %1964, %v2146_v9  }
 0x188   : > { %v3098_v48 = vsel %vm913_vm15, 1.0, %v833_v38  ;;  %v3100_v18 = vsel %vm914_vm0, 1.0, %v834_v33 }
 0x18b   : > { %1959 = vset.pattern.permute.xlu2 %v2061_v16 }
 0x18c   : > { %1958 = vset.pattern.permute.xlu1 %v2061_v16  ;;  %v770_v27 = vpop.permute.xlu1 %769  ;;  %1084 = vperm.xlu2 %1959, %v2144_v8   ;;  %v864_v51 = vpop.permute.xlu2 %863 }
 0x18d   : > { %vm807_vm1 = vcmp.eq.s32.totalorder %v2131_v2, %v770_v27  ;;  %vm808_vm7 = vcmp.eq.s32.totalorder %v2373_v22, %v770_v27  ;;  %vm907_vm11 = vcmp.eq.s32.totalorder %v2131_v2, %v864_v51  ;;  %vm908_vm14 = vcmp.eq.s32.totalorder %v2373_v22, %v864_v51  ;;  %1081 = vperm.xlu1 %1958, %v3880_v11   ;;  %v882_v3 = vpop.permute.xlu0 %881 }
 0x18e   : > { %v839_v39 = vsel %vm807_vm1, 1.0, %v2798_v49  ;;  %v840_v41 = vsel %vm808_vm7, 1.0, %v2800_v52  ;;  %v3113_v17 = vsel %vm907_vm11, 1.0, %v827_v34  ;;  %v3115_v16 = vsel %vm908_vm14, 1.0, %v828_v21 }
 0x18f   : > { %vm919_vm6 = vcmp.eq.s32.totalorder %v2131_v2, %v882_v3  ;;  %vm920_vm4 = vcmp.eq.s32.totalorder %v2373_v22, %v882_v3  ;;  %1423 = vperm.xlu0 %1964, %v2156_v14  }
 0x190   : > { %v3119_v50 = vsel %vm919_vm6, 1.0, %v839_v39  ;;  %v3121_v15 = vsel %vm920_vm4, 1.0, %v840_v41  ;;  %v2064_v39 = vmov 10  }
 0x194   : > { %v779_v38 = vpop.permute.xlu1 %778  ;;  %1090 = vperm.xlu2 %1959, %v2142_v7   ;;  %v870_v49 = vpop.permute.xlu2 %869 }
 0x195   : > { %vm813_vm8 = vcmp.eq.s32.totalorder %v2131_v2, %v779_v38  ;;  %vm814_vm13 = vcmp.eq.s32.totalorder %v2373_v22, %v779_v38  ;;  %vm911_vm5 = vcmp.eq.s32.totalorder %v2131_v2, %v870_v49  ;;  %vm912_vm2 = vcmp.eq.s32.totalorder %v2373_v22, %v870_v49  ;;  %1087 = vperm.xlu1 %1958, %v2156_v14   ;;  %v891_v60 = vpop.permute.xlu0 %890 }
 0x196   : > { %v845_v52 = vsel %vm813_vm8, 1.0, %v2858_v55  ;;  %v846_v34 = vsel %vm814_vm13, 1.0, %v2860_v1  ;;  %v3133_v21 = vsel %vm911_vm5, 1.0, %v2952_v47  ;;  %v3136_v33 = vsel %vm912_vm2, 1.0, %v2954_v46 }
 0x197   : > { %vm925_vm3 = vcmp.eq.s32.totalorder %v2131_v2, %v891_v60  ;;  %vm926_vm9 = vcmp.eq.s32.totalorder %v2373_v22, %v891_v60  ;;  %1974 = vset.pattern.permute.xlu0 %v2064_v39 }
 0x198   : > { %v3140_v27 = vsel %vm925_vm3, 1.0, %v845_v52  ;;  %v3142_v51 = vsel %vm926_vm9, 1.0, %v846_v34  ;;  %1308 = vperm.xlu0 %1974, %v2144_v8  }
 0x19c   : > { %v788_v55 = vpop.permute.xlu1 %787  ;;  %1099 = vperm.xlu2 %1959, %v2168_v20   ;;  %v879_v1 = vpop.permute.xlu2 %878 }
 0x19d   : > { %vm819_vm10 = vcmp.eq.s32.totalorder %v2131_v2, %v788_v55  ;;  %vm820_vm12 = vcmp.eq.s32.totalorder %v2373_v22, %v788_v55  ;;  %vm917_vm15 = vcmp.eq.s32.totalorder %v2131_v2, %v879_v1  ;;  %vm918_vm0 = vcmp.eq.s32.totalorder %v2373_v22, %v879_v1  ;;  %1096 = vperm.xlu1 %1958, %v3886_v43   ;;  %v900_v38 = vpop.permute.xlu0 %899 }
 0x19e   : > { %v851_v47 = vsel %vm819_vm10, 1.0, %v2899_v45  ;;  %v852_v46 = vsel %vm820_vm12, 1.0, %v2901_v0  ;;  %v3155_v41 = vsel %vm917_vm15, 1.0, %v2981_v36  ;;  %v3158_v3 = vsel %vm918_vm0, 1.0, %v2983_v42 }
 0x19f   : > { %vm931_vm1 = vcmp.eq.s32.totalorder %v2131_v2, %v900_v38  ;;  %vm932_vm7 = vcmp.eq.s32.totalorder %v2373_v22, %v900_v38 }
 0x1a0   : > { %v3162_v49 = vsel %vm931_vm1, 1.0, %v851_v47  ;;  %v3164_v52 = vsel %vm932_vm7, 1.0, %v852_v46  ;;  %1347 = vperm.xlu0 %1974, %v2200_v35  }
 0x1a4   : > { %1108 = vperm.xlu2 %1959, %v2180_v26   ;;  %v888_v45 = vpop.permute.xlu2 %887 }
 0x1a5   : > { %vm923_vm11 = vcmp.eq.s32.totalorder %v2131_v2, %v888_v45  ;;  %vm924_vm14 = vcmp.eq.s32.totalorder %v2373_v22, %v888_v45  ;;  %1105 = vperm.xlu1 %1958, %v3890_v53   ;;  %v861_v0 = vpop.permute.xlu1 %860 }
 0x1a6   : > { %v3172_v36 = vsel %vm923_vm11, 1.0, %v3002_v10  ;;  %v3175_v42 = vsel %vm924_vm14, 1.0, %v3004_v12  ;;  %vm905_vm6 = vcmp.eq.s32.totalorder %v2131_v2, %v861_v0  ;;  %vm906_vm4 = vcmp.eq.s32.totalorder %v2373_v22, %v861_v0  ;;  %v973_v55 = vpop.permute.xlu0 %972 }
 0x1a7   : > { %v937_v34 = vsel %vm905_vm6, 1.0, %v2936_v24  ;;  %v938_v60 = vsel %vm906_vm4, 1.0, %v2939_v29  ;;  %vm1017_vm8 = vcmp.eq.s32.totalorder %v2131_v2, %v973_v55  ;;  %vm1018_vm13 = vcmp.eq.s32.totalorder %v2373_v22, %v973_v55 }
 0x1a8   : > { %v3183_v1 = vsel %vm1017_vm8, 1.0, %v937_v34  ;;  %v3185_v10 = vsel %vm1018_vm13, 1.0, %v938_v60  ;;  %1311 = vperm.xlu0 %1974, %v2156_v14  }
 0x1ac   : > { %1117 = vperm.xlu2 %1959, %v2192_v32   ;;  %v897_v12 = vpop.permute.xlu2 %896 }
 0x1ad   : > { %vm929_vm5 = vcmp.eq.s32.totalorder %v2131_v2, %v897_v12  ;;  %vm930_vm2 = vcmp.eq.s32.totalorder %v2373_v22, %v897_v12  ;;  %1114 = vperm.xlu1 %1958, %v3894_v25   ;;  %v867_v24 = vpop.permute.xlu1 %866 }
 0x1ae   : > { %v3193_v29 = vsel %vm929_vm5, 1.0, %v3035_v6  ;;  %v3196_v47 = vsel %vm930_vm2, 1.0, %v3037_v61  ;;  %vm909_vm3 = vcmp.eq.s32.totalorder %v2131_v2, %v867_v24  ;;  %vm910_vm9 = vcmp.eq.s32.totalorder %v2373_v22, %v867_v24  ;;  %v988_v45 = vpop.permute.xlu0 %987 }
 0x1af   : > { %v941_v46 = vsel %vm909_vm3, 1.0, %v2974_v63  ;;  %v942_v38 = vsel %vm910_vm9, 1.0, %v2976_v44  ;;  %vm1027_vm10 = vcmp.eq.s32.totalorder %v2131_v2, %v988_v45  ;;  %vm1028_vm12 = vcmp.eq.s32.totalorder %v2373_v22, %v988_v45 }
 0x1b0   : > { %1314 = vperm.xlu0 %1974, %v2142_v7  }
 0x1b4   : > { %1960 = vset.pattern.permute.xlu2 %v2062_v4 }
 0x1b5   : > { %1123 = vperm.xlu1 %1958, %v2200_v35   ;;  %v876_v6 = vpop.permute.xlu1 %875  ;;  %1190 = vperm.xlu2 %1960, %v2146_v9   ;;  %v970_v61 = vpop.permute.xlu2 %969 }
 0x1b6   : > { %vm915_vm15 = vcmp.eq.s32.totalorder %v2131_v2, %v876_v6  ;;  %vm916_vm0 = vcmp.eq.s32.totalorder %v2373_v22, %v876_v6  ;;  %vm1015_vm1 = vcmp.eq.s32.totalorder %v2131_v2, %v970_v61  ;;  %vm1016_vm7 = vcmp.eq.s32.totalorder %v2373_v22, %v970_v61  ;;  %v997_v12 = vpop.permute.xlu0 %996 }
 0x1b7   : > { %v947_v63 = vsel %vm915_vm15, 1.0, %v2994_v31  ;;  %v948_v44 = vsel %vm916_vm0, 1.0, %v2997_v56  ;;  %v3215_v0 = vsel %vm1015_vm1, 1.0, %v3077_v54  ;;  %v3218_v34 = vsel %vm1016_vm7, 1.0, %v3079_v59 }
 0x1b8   : > { %v3220_v60 = vsel %vm1027_vm10, 1.0, %v947_v63  ;;  %v3222_v55 = vsel %vm1028_vm12, 1.0, %v948_v44  ;;  %1317 = vperm.xlu0 %1974, %v2154_v13   ;;  %vm1033_vm11 = vcmp.eq.s32.totalorder %v2131_v2, %v997_v12  ;;  %vm1034_vm14 = vcmp.eq.s32.totalorder %v2373_v22, %v997_v12 }
 0x1bd   : > { %1962 = vset.pattern.permute.xlu1 %v2062_v4  ;;  %v885_v31 = vpop.permute.xlu1 %884  ;;  %1199 = vperm.xlu2 %1960, %v2156_v14   ;;  %v979_v56 = vpop.permute.xlu2 %978 }
 0x1be   : > { %vm921_vm6 = vcmp.eq.s32.totalorder %v2131_v2, %v885_v31  ;;  %vm922_vm4 = vcmp.eq.s32.totalorder %v2373_v22, %v885_v31  ;;  %vm1021_vm8 = vcmp.eq.s32.totalorder %v2131_v2, %v979_v56  ;;  %vm1022_vm13 = vcmp.eq.s32.totalorder %v2373_v22, %v979_v56  ;;  %1196 = vperm.xlu1 %1962, %v2144_v8   ;;  %v1006_v61 = vpop.permute.xlu0 %1005 }
 0x1bf   : > { %v953_v54 = vsel %vm921_vm6, 1.0, %v3019_v23  ;;  %v954_v59 = vsel %vm922_vm4, 1.0, %v3022_v30  ;;  %v3236_v24 = vsel %vm1021_vm8, 1.0, %v941_v46  ;;  %v3238_v45 = vsel %vm1022_vm13, 1.0, %v942_v38 }
 0x1c0   : > { %v3240_v14 = vsel %vm1033_vm11, 1.0, %v953_v54  ;;  %v3242_v6 = vsel %vm1034_vm14, 1.0, %v954_v59  ;;  %1338 = vperm.xlu0 %1974, %v3894_v25   ;;  %vm1039_vm5 = vcmp.eq.s32.totalorder %v2131_v2, %v1006_v61  ;;  %vm1040_vm2 = vcmp.eq.s32.totalorder %v2373_v22, %v1006_v61 }
 0x1c5   : > { %v894_v63 = vpop.permute.xlu1 %893  ;;  %1205 = vperm.xlu2 %1960, %v2154_v13   ;;  %v985_v23 = vpop.permute.xlu2 %984 }
 0x1c6   : > { %vm927_vm3 = vcmp.eq.s32.totalorder %v2131_v2, %v894_v63  ;;  %vm928_vm9 = vcmp.eq.s32.totalorder %v2373_v22, %v894_v63  ;;  %vm1025_vm10 = vcmp.eq.s32.totalorder %v2131_v2, %v985_v23  ;;  %vm1026_vm12 = vcmp.eq.s32.totalorder %v2373_v22, %v985_v23  ;;  %1202 = vperm.xlu1 %1962, %v2142_v7  }
 0x1c7   : > { %v959_v30 = vsel %vm927_vm3, 1.0, %v3066_v5  ;;  %v960_v46 = vsel %vm928_vm9, 1.0, %v3069_v58  ;;  %v3256_v38 = vsel %vm1025_vm10, 1.0, %v3098_v48  ;;  %v3259_v44 = vsel %vm1026_vm12, 1.0, %v3100_v18  ;;  %v3267_v56 = vpop.permute.xlu0 %1078 }
 0x1c8   : > { %v3261_v12 = vsel %vm1039_vm5, 1.0, %v959_v30  ;;  %v3263_v31 = vsel %vm1040_vm2, 1.0, %v960_v46  ;;  %1982 = vset.pattern.permute.xlu0 %v2062_v4 }
 0x1c9   : > { %1208 = vperm.xlu0 %1982, %v3886_v43  }
 0x1cd   : > { %1963 = vset.pattern.permute.xlu2 %v2064_v39  ;;  %v994_v5 = vpop.permute.xlu2 %993 }
 0x1ce   : > { %vm1031_vm15 = vcmp.eq.s32.totalorder %v2131_v2, %v994_v5  ;;  %vm1032_vm0 = vcmp.eq.s32.totalorder %v2373_v22, %v994_v5  ;;  %1211 = vperm.xlu1 %1962, %v2168_v20   ;;  %v967_v58 = vpop.permute.xlu1 %966  ;;  %1302 = vperm.xlu2 %1963, %v2146_v9  }
 0x1cf   : > { %v3275_v48 = vsel %vm1031_vm15, 1.0, %v3119_v50  ;;  %v3278_v18 = vsel %vm1032_vm0, 1.0, %v3121_v15  ;;  %vm1013_vm1 = vcmp.eq.s32.totalorder %v2131_v2, %v967_v58  ;;  %vm1014_vm7 = vcmp.eq.s32.totalorder %v2373_v22, %v967_v58  ;;  %v1094_v50 = vpop.permute.xlu0 %1093 }
 0x1d0   : > { %v3283_v54 = vsel %vm1013_vm1, 1.0, %v3090_v37  ;;  %v3286_v59 = vsel %vm1014_vm7, 1.0, %v3093_v28  ;;  %vm1135_vm8 = vcmp.eq.s32.totalorder %v2131_v2, %v1094_v50  ;;  %vm1136_vm13 = vcmp.eq.s32.totalorder %v2373_v22, %v1094_v50 }
 0x1d1   : > { %1229 = vperm.xlu0 %1982, %v2192_v32  }
 0x1d5   : > { %v1003_v61 = vpop.permute.xlu2 %1002 }
 0x1d6   : > { %vm1037_vm11 = vcmp.eq.s32.totalorder %v2131_v2, %v1003_v61  ;;  %vm1038_vm14 = vcmp.eq.s32.totalorder %v2373_v22, %v1003_v61  ;;  %1965 = vset.pattern.permute.xlu1 %v2064_v39  ;;  %v976_v9 = vpop.permute.xlu1 %975  ;;  %1966 = vset.pattern.permute.xlu2 %v2063_v62 }
 0x1d7   : > { %v3294_v15 = vsel %vm1037_vm11, 1.0, %v3140_v27  ;;  %v3297_v37 = vsel %vm1038_vm14, 1.0, %v3142_v51  ;;  %vm1019_vm6 = vcmp.eq.s32.totalorder %v2131_v2, %v976_v9  ;;  %vm1020_vm4 = vcmp.eq.s32.totalorder %v2373_v22, %v976_v9  ;;  %1305 = vperm.xlu1 %1965, %v3880_v11   ;;  %1417 = vperm.xlu2 %1966, %v3880_v11   ;;  %v1103_v30 = vpop.permute.xlu0 %1102 }
 0x1d8   : > { %v3304_v28 = vsel %vm1019_vm6, 1.0, %v3113_v17  ;;  %v3307_v63 = vsel %vm1020_vm4, 1.0, %v3115_v16  ;;  %vm1141_vm10 = vcmp.eq.s32.totalorder %v2131_v2, %v1103_v30  ;;  %vm1142_vm12 = vcmp.eq.s32.totalorder %v2373_v22, %v1103_v30  ;;  %v1536_v30 = vld [vmem:[%s3816_s1 + $0x58] sm:$0xff] }
 0x1d9   : > { %1986 = vset.pattern.permute.xlu0 %v2064_v39 }
 0x1da   : > { %1344 = vperm.xlu0 %1986, %v3877_v57  }
 0x1dd   : > { %v1012_v27 = vpop.permute.xlu2 %1011 }
 0x1de   : > { %vm1043_vm5 = vcmp.eq.s32.totalorder %v2131_v2, %v1012_v27  ;;  %vm1044_vm2 = vcmp.eq.s32.totalorder %v2373_v22, %v1012_v27  ;;  %v982_v11 = vpop.permute.xlu1 %981 }
 0x1df   : > { %v3316_v17 = vsel %vm1043_vm5, 1.0, %v3162_v49  ;;  %v3319_v16 = vsel %vm1044_vm2, 1.0, %v3164_v52  ;;  %vm1023_vm3 = vcmp.eq.s32.totalorder %v2131_v2, %v982_v11  ;;  %vm1024_vm9 = vcmp.eq.s32.totalorder %v2373_v22, %v982_v11  ;;  %1323 = vperm.xlu1 %1965, %v2168_v20   ;;  %1435 = vperm.xlu2 %1966, %v2168_v20  }
 0x1e0   : > { %v1055_v51 = vsel %vm1023_vm3, 1.0, %v3133_v21  ;;  %v1056_v23 = vsel %vm1024_vm9, 1.0, %v3136_v33 }
 0x1e1   : > { %v3327_v46 = vsel %vm1136_vm13, 1.0, %v1056_v23  ;;  %v3329_v49 = vsel %vm1135_vm8, 1.0, %v1055_v51  ;;  %v1539_v23 = vld [vmem:[%s3816_s1 + $0x70] sm:$0xff] }
 0x1e2   : > { %1987 = vset.pattern.permute.xlu0 %v2063_v62 }
 0x1e6   : > { %v991_v52 = vpop.permute.xlu1 %990  ;;  %v1085_v5 = vpop.permute.xlu2 %1084 }
 0x1e7   : > { %vm1029_vm15 = vcmp.eq.s32.totalorder %v2131_v2, %v991_v52  ;;  %vm1030_vm0 = vcmp.eq.s32.totalorder %v2373_v22, %v991_v52  ;;  %vm1129_vm1 = vcmp.eq.s32.totalorder %v2131_v2, %v1085_v5  ;;  %vm1130_vm7 = vcmp.eq.s32.totalorder %v2373_v22, %v1085_v5  ;;  %1967 = vset.pattern.permute.xlu1 %v2062_v4 }
 0x1e8   : > { %v1061_v20 = vsel %vm1029_vm15, 1.0, %v3155_v41  ;;  %v1062_v21 = vsel %vm1030_vm0, 1.0, %v3158_v3  ;;  %v3342_v33 = vsel %vm1129_vm1, 1.0, %v3183_v1  ;;  %v3345_v58 = vsel %vm1130_vm7, 1.0, %v3185_v10  ;;  %1968 = vset.pattern.permute.xlu2 %v2062_v4  ;;  %1214 = vperm.xlu1 %1967, %v2166_v19   ;;  %v1112_v41 = vpop.permute.xlu0 %1111  ;;  %v1540_v3 = vld [vmem:[%s3816_s1 + $0x78] sm:$0xff] }
 0x1e9   : > { %1235 = vperm.xlu2 %1968, %v2200_v35   ;;  %v3350_v61 = vsel %vm1142_vm12, 1.0, %v1062_v21  ;;  %v3354_v9 = vsel %vm1141_vm10, 1.0, %v1061_v20  ;;  %vm1147_vm11 = vcmp.eq.s32.totalorder %v2131_v2, %v1112_v41  ;;  %vm1148_vm14 = vcmp.eq.s32.totalorder %v2373_v22, %v1112_v41  ;;  %1592 = vmatpush.msra.mxu0 %v1540_v3 }
 0x1ea   : > { %1845 = vmatpush.msra.mxu2 %v1540_v3  ;;  %1846 = vmatpush.msra.mxu3 %v1540_v3 }
 0x1eb   : > { %1593 = vmatpush.msra.mxu0 %v1539_v23 }
 0x1ec   : > { %1847 = vmatpush.msra.mxu2 %v1539_v23  ;;  %1848 = vmatpush.msra.mxu3 %v1539_v23 }
 0x1ee   : > { %v1000_v1 = vpop.permute.xlu1 %999  ;;  %v1091_v10 = vpop.permute.xlu2 %1090 }
 0x1ef   : > { %vm1035_vm6 = vcmp.eq.s32.totalorder %v2131_v2, %v1000_v1  ;;  %vm1036_vm4 = vcmp.eq.s32.totalorder %v2373_v22, %v1000_v1  ;;  %vm1133_vm8 = vcmp.eq.s32.totalorder %v2131_v2, %v1091_v10  ;;  %vm1134_vm13 = vcmp.eq.s32.totalorder %v2373_v22, %v1091_v10  ;;  %v1535_v1 = vld [vmem:[%s3816_s1 + $0x50] sm:$0xff] }
 0x1f0   : > { %v1067_v50 = vsel %vm1035_vm6, 1.0, %v3172_v36  ;;  %v1068_v27 = vsel %vm1036_vm4, 1.0, %v3175_v42  ;;  %v3368_v11 = vsel %vm1133_vm8, 1.0, %v3236_v24  ;;  %v3371_v51 = vsel %vm1134_vm13, 1.0, %v3238_v45  ;;  %1969 = vset.pattern.permute.xlu1 %v2063_v62  ;;  %v1538_v36 = vld [vmem:[%s3816_s1 + $0x68] sm:$0xff]  ;;  %v1121_v45 = vpop.permute.xlu0 %1120 }
 0x1f1   : > { %1970 = vset.pattern.permute.xlu2 %v2064_v39  ;;  %1420 = vperm.xlu1 %1969, %v2144_v8   ;;  %v3384_v42 = vsel %vm1148_vm14, 1.0, %v1068_v27  ;;  %v3388_v24 = vsel %vm1147_vm11, 1.0, %v1067_v50  ;;  %v1537_v8 = vld [vmem:[%s3816_s1 + $0x60] sm:$0xff]  ;;  %vm1153_vm5 = vcmp.eq.s32.totalorder %v2131_v2, %v1121_v45  ;;  %vm1154_vm2 = vcmp.eq.s32.totalorder %v2373_v22, %v1121_v45 }
 0x1f2   : > { %1326 = vperm.xlu2 %1970, %v2166_v19   ;;  %1594 = vmatpush.msra.mxu0 %v1538_v36 }
 0x1f3   : > { %1849 = vmatpush.msra.mxu2 %v1538_v36  ;;  %1850 = vmatpush.msra.mxu3 %v1538_v36 }
 0x1f4   : > { %1595 = vmatpush.msra.mxu0 %v1537_v8 }
 0x1f5   : > { %1851 = vmatpush.msra.mxu2 %v1537_v8  ;;  %1852 = vmatpush.msra.mxu3 %v1537_v8 }
 0x1f6   : > { %v1009_v52 = vpop.permute.xlu1 %1008  ;;  %v1100_v5 = vpop.permute.xlu2 %1099  ;;  %1596 = vmatpush.msra.mxu0 %v1536_v30 }
 0x1f7   : > { %vm1041_vm3 = vcmp.eq.s32.totalorder %v2131_v2, %v1009_v52  ;;  %vm1042_vm9 = vcmp.eq.s32.totalorder %v2373_v22, %v1009_v52  ;;  %vm1139_vm10 = vcmp.eq.s32.totalorder %v2131_v2, %v1100_v5  ;;  %vm1140_vm12 = vcmp.eq.s32.totalorder %v2373_v22, %v1100_v5  ;;  %1853 = vmatpush.msra.mxu2 %v1536_v30 }
 0x1f8   : > { %v1073_v20 = vsel %vm1041_vm3, 1.0, %v3193_v29  ;;  %v1074_v21 = vsel %vm1042_vm9, 1.0, %v3196_v47  ;;  %v3406_v41 = vsel %vm1139_vm10, 1.0, %v3220_v60  ;;  %v3409_v3 = vsel %vm1140_vm12, 1.0, %v3222_v55  ;;  %v1534_v29 = vld [vmem:[%s3816_s1 + $0x48] sm:$0xff]  ;;  %1597 = vmatpush.msra.mxu0 %v1535_v1  ;;  %1854 = vmatpush.msra.mxu3 %v1536_v30  ;;  %v1532_v55 = vld [vmem:[%s3816_s1 + $0x38] sm:$0xff] }
 0x1f9   : > { %1438 = vperm.xlu1 %1969, %v2166_v19   ;;  %v3420_v47 = vsel %vm1153_vm5, 1.0, %v1073_v20  ;;  %v3424_v60 = vsel %vm1154_vm2, 1.0, %v1074_v21  ;;  %1855 = vmatpush.msra.mxu2 %v1535_v1  ;;  %v1533_v19 = vld [vmem:[%s3816_s1 + $0x40] sm:$0xff]  ;;  %v1527_v21 = vld [vmem:[%s3816_s1 + $0x10] sm:$0xff] }
 0x1fa   : > { %1971 = vset.pattern.permute.xlu2 %v2063_v62  ;;  %1598 = vmatpush.msra.mxu0 %v1534_v29 }
 0x1fb   : > { %1459 = vperm.xlu2 %1971, %v2200_v35   ;;  %1857 = vmatpush.msra.mxu2 %v1534_v29 }
 0x1fc   : > { %1599 = vmatpush.msra.mxu0 %v1533_v19  ;;  %1856 = vmatpush.msra.mxu3 %v1535_v1 }
 0x1fd   : > { %1859 = vmatpush.msra.mxu2 %v1533_v19 }
 0x1fe   : > { %v1109_v10 = vpop.permute.xlu2 %1108  ;;  %1600 = vmatpush.msra.mxu0 %v1532_v55  ;;  %1858 = vmatpush.msra.mxu3 %v1534_v29 }
 0x1ff   : > { %vm1145_vm15 = vcmp.eq.s32.totalorder %v2131_v2, %v1109_v10  ;;  %vm1146_vm0 = vcmp.eq.s32.totalorder %v2373_v22, %v1109_v10  ;;  %v1082_v35 = vpop.permute.xlu1 %1081  ;;  %1861 = vmatpush.msra.mxu2 %v1532_v55 }
 0x200   : > { %v3437_v50 = vsel %vm1145_vm15, 1.0, %v3240_v14  ;;  %v3440_v27 = vsel %vm1146_vm0, 1.0, %v3242_v6  ;;  %vm1127_vm1 = vcmp.eq.s32.totalorder %v2131_v2, %v1082_v35  ;;  %vm1128_vm7 = vcmp.eq.s32.totalorder %v2373_v22, %v1082_v35  ;;  %v1531_v14 = vld [vmem:[%s3816_s1 + $0x30] sm:$0xff]  ;;  %v1530_v6 = vld [vmem:[%s3816_s1 + $0x28] sm:$0xff]  ;;  %1860 = vmatpush.msra.mxu3 %v1533_v19 }
 0x201   : > { %v3445_v23 = vsel %vm1127_vm1, 1.0, %v3215_v0  ;;  %v3448_v36 = vsel %vm1128_vm7, 1.0, %v3218_v34  ;;  %1972 = vset.pattern.permute.xlu1 %v2062_v4  ;;  %1601 = vmatpush.msra.mxu0 %v1531_v14  ;;  %v1529_v0 = vld [vmem:[%s3816_s1 + $0x20] sm:$0xff]  ;;  %v1528_v34 = vld [vmem:[%s3816_s1 + $0x18] sm:$0xff]  ;;  %vm1125_vm1 = vcmp.eq.s32.totalorder %v2131_v2, %v3267_v56  ;;  %vm1126_vm7 = vcmp.eq.s32.totalorder %v2373_v22, %v3267_v56 }
 0x202   : > { %1217 = vperm.xlu1 %1972, %v3890_v53   ;;  %1863 = vmatpush.msra.mxu2 %v1531_v14  ;;  %v1157_v56 = vsel %vm1125_vm1, 1.0, %v3283_v54 }
 0x203   : > { %1973 = vset.pattern.permute.xlu2 %v2062_v4  ;;  %1602 = vmatpush.msra.mxu0 %v1530_v6 }
 0x204   : > { %1220 = vperm.xlu2 %1973, %v2180_v26   ;;  %1862 = vmatpush.msra.mxu3 %v1532_v55 }
 0x205   : > { %1603 = vmatpush.msra.mxu0 %v1529_v0  ;;  %1865 = vmatpush.msra.mxu2 %v1530_v6 }
 0x206   : > { %v1118_v8 = vpop.permute.xlu2 %1117  ;;  %1864 = vmatpush.msra.mxu3 %v1531_v14  ;;  %v3525_v14 = vpop.permute.xlu0 %1193 }
 0x207   : > { %vm1151_vm11 = vcmp.eq.s32.totalorder %v2131_v2, %v1118_v8  ;;  %vm1152_vm14 = vcmp.eq.s32.totalorder %v2373_v22, %v1118_v8  ;;  %v1088_v45 = vpop.permute.xlu1 %1087  ;;  %1604 = vmatpush.msra.mxu0 %v1528_v34  ;;  %1867 = vmatpush.msra.mxu2 %v1529_v0 }
 0x208   : > { %v3469_v30 = vsel %vm1151_vm11, 1.0, %v3261_v12  ;;  %v3472_v52 = vsel %vm1152_vm14, 1.0, %v3263_v31  ;;  %vm1131_vm6 = vcmp.eq.s32.totalorder %v2131_v2, %v1088_v45  ;;  %vm1132_vm4 = vcmp.eq.s32.totalorder %v2373_v22, %v1088_v45  ;;  %v1526_v12 = vld [vmem:[%s3816_s1 + $0x8] sm:$0xff]  ;;  %1866 = vmatpush.msra.mxu3 %v1530_v6 }
 0x209   : > { %v1163_v5 = vsel %vm1131_vm6, 1.0, %v3304_v28  ;;  %v1164_v20 = vsel %vm1132_vm4, 1.0, %v3307_v63  ;;  %v1542_v31 = vld [vmem:[%s3816_s1 + $0x88] sm:$0xff]  ;;  %1605 = vmatpush.msra.mxu0 %v1527_v21  ;;  %v1525_v28 = vld [vmem:[%s3816_s1] sm:$0xff]  ;;  %1869 = vmatpush.msra.mxu2 %v1528_v34 }
 0x20a   : > { %1975 = vset.pattern.permute.xlu1 %v2064_v39  ;;  %1671 = vmatpush.msra.mxu1 %v1542_v31  ;;  %v1541_v63 = vld [vmem:[%s3816_s1 + $0x80] sm:$0xff] }
 0x20b   : > { %1329 = vperm.xlu1 %1975, %v3890_v53   ;;  %1606 = vmatpush.msra.mxu0 %v1526_v12 }
 0x20c   : > { %1976 = vset.pattern.permute.xlu2 %v2064_v39  ;;  %1672 = vmatpush.msra.mxu1 %v1541_v63 }
 0x20d   : > { %1332 = vperm.xlu2 %1976, %v2180_v26   ;;  %1607 = vmatpush.msra.mxu0 %v1525_v28 }
 0x20e   : > { %1868 = vmatpush.msra.mxu3 %v1529_v0  ;;  %1871 = vmatpush.msra.mxu2 %v1527_v21  ;;  %v1415_v8 = vpop.permute.xlu0 %1414 }
 0x20f   : > { %v1097_v1 = vpop.permute.xlu1 %1096  ;;  %v3497_v29 = vpop.permute.xlu2 %1190  ;;  %vm1462_vm6 = vcmp.eq.s32.totalorder %v2373_v22, %v1415_v8 }
 0x210   : > { %vm1137_vm8 = vcmp.eq.s32.totalorder %v2131_v2, %v1097_v1  ;;  %vm1138_vm13 = vcmp.eq.s32.totalorder %v2373_v22, %v1097_v1  ;;  %1870 = vmatpush.msra.mxu3 %v1528_v34  ;;  %1873 = vmatpush.msra.mxu2 %v1526_v12  ;;  %vm1238_vm11 = vcmp.eq.s32.totalorder %v2373_v22, %v3497_v29 }
 0x211   : > { %v3502_v19 = vsel %vm1137_vm8, 1.0, %v3256_v38  ;;  %v3505_v55 = vsel %vm1138_vm13, 1.0, %v3259_v44  ;;  %vm1237_vm14 = vcmp.eq.s32.totalorder %v2131_v2, %v3497_v29  ;;  %vm1461_vm8 = vcmp.eq.s32.totalorder %v2131_v2, %v1415_v8 }
 0x212   : > { %1872 = vmatpush.msra.mxu3 %v1527_v21  ;;  %1875 = vmatpush.msra.mxu2 %v1525_v28  ;;  %vm1543_vm13 = vcmask 130048  }
 0x213   : > { %1977 = vset.pattern.permute.xlu1 %v2063_v62 }
 0x214   : > { %1441 = vperm.xlu1 %1977, %v3890_v53   ;;  %1874 = vmatpush.msra.mxu3 %v1526_v12 }
 0x215   : > { %1978 = vset.pattern.permute.xlu2 %v2063_v62 }
 0x216   : > { %1444 = vperm.xlu2 %1978, %v2180_v26   ;;  %1876 = vmatpush.msra.mxu3 %v1525_v28  ;;  %v3571_v21 = vpop.permute.xlu0 %1423 }
 0x217   : > { %v1106_v10 = vpop.permute.xlu1 %1105  ;;  %v1200_v35 = vpop.permute.xlu2 %1199 }
 0x218   : > { %vm1143_vm5 = vcmp.eq.s32.totalorder %v2131_v2, %v1106_v10  ;;  %vm1144_vm2 = vcmp.eq.s32.totalorder %v2373_v22, %v1106_v10  ;;  %vm1243_vm3 = vcmp.eq.s32.totalorder %v2131_v2, %v1200_v35  ;;  %vm1244_vm9 = vcmp.eq.s32.totalorder %v2373_v22, %v1200_v35  ;;  %1877 = vmatpush.msrb.mxu3 %v1542_v31 }
 0x219   : > { %v3516_v53 = vsel %vm1143_vm5, 1.0, %v3275_v48  ;;  %v3519_v38 = vsel %vm1144_vm2, 1.0, %v3278_v18  ;;  %v3521_v44 = vsel %vm1244_vm9, 1.0, %v1164_v20  ;;  %v3523_v26 = vsel %vm1243_vm3, 1.0, %v1163_v5 }
 0x21a   : > { %1878 = vmatpush.msrb.mxu3 %v1541_v63 }
 0x21c   : > { %1979 = vset.pattern.permute.xlu1 %v2062_v4 }
 0x21d   : > { %1223 = vperm.xlu1 %1979, %v3873_v40  }
 0x21e   : > { %1426 = vperm.xlu2 %1978, %v2142_v7   ;;  %v3581_v31 = vpop.permute.xlu0 %1308 }
 0x21f   : > { %v1115_v6 = vpop.permute.xlu1 %1114  ;;  %v1206_v0 = vpop.permute.xlu2 %1205 }
 0x220   : > { %vm1149_vm10 = vcmp.eq.s32.totalorder %v2131_v2, %v1115_v6  ;;  %vm1150_vm12 = vcmp.eq.s32.totalorder %v2373_v22, %v1115_v6  ;;  %vm1247_vm15 = vcmp.eq.s32.totalorder %v2131_v2, %v1206_v0  ;;  %vm1248_vm0 = vcmp.eq.s32.totalorder %v2373_v22, %v1206_v0 }
 0x221   : > { %v3535_v48 = vsel %vm1149_vm10, 1.0, %v3294_v15  ;;  %v3538_v18 = vsel %vm1150_vm12, 1.0, %v3297_v37  ;;  %v3541_v34 = vsel %vm1248_vm0, 1.0, %v3327_v46  ;;  %v3544_v7 = vsel %vm1247_vm15, 1.0, %v3329_v49 }
 0x222   : > { %v1158_v15 = vsel %vm1126_vm7, 1.0, %v3286_v59  ;;  %vm1239_vm12 = vcmp.eq.s32.totalorder %v2131_v2, %v3525_v14  ;;  %vm1240_vm15 = vcmp.eq.s32.totalorder %v2373_v22, %v3525_v14 }
 0x223   : > { %v1270_v46 = vsel %vm1238_vm11, 1.0, %v1158_v15  ;;  %v1272_v10 = vsel %vm1240_vm15, 1.0, %v3448_v36 }
 0x225   : > { %1980 = vset.pattern.permute.xlu1 %v2064_v39 }
 0x226   : > { %1447 = vperm.xlu2 %1978, %v3873_v40   ;;  %1335 = vperm.xlu1 %1980, %v3873_v40   ;;  %v1269_v40 = vsel %vm1237_vm14, 1.0, %v1157_v56  ;;  %v1348_v1 = vpop.permute.xlu0 %1347 }
 0x227   : > { %v3559_v37 = vpop.permute.xlu1 %1123  ;;  %vm1380_vm9 = vcmp.eq.s32.totalorder %v2373_v22, %v1348_v1 }
 0x228   : > { %vm1156_vm4 = vcmp.eq.s32.totalorder %v2373_v22, %v3559_v37  ;;  %v1303_v49 = vpop.permute.xlu2 %1302  ;;  %vm1155_vm14 = vcmp.eq.s32.totalorder %v2131_v2, %v3559_v37 }
 0x229   : > { %v1188_v45 = vsel %vm1156_vm4, 1.0, %v3319_v16  ;;  %vm1349_vm5 = vcmp.eq.s32.totalorder %v2131_v2, %v1303_v49  ;;  %vm1350_vm2 = vcmp.eq.s32.totalorder %v2373_v22, %v1303_v49 }
 0x22a   : > { %v1381_v59 = vsel %vm1349_vm5, 1.0, %v1269_v40  ;;  %v1382_v5 = vsel %vm1350_vm2, 1.0, %v1270_v46 }
 0x22b   : > { %v1493_v20 = vsel %vm1461_vm8, 1.0, %v1381_v59  ;;  %v1494_v54 = vsel %vm1462_vm6, 1.0, %v1382_v5  ;;  %vm1379_vm8 = vcmp.eq.s32.totalorder %v2131_v2, %v1348_v1 }
 0x22c   : > { %1608 = vmatmul.f32.vlgmr.msra.gmra.mxu0 %v1493_v20  ;;  %1823 = vmatmul.msk.f32.vlgmr.msra.gmra.mxu1 %vm1543_vm13, %v1494_v54 }
 0x22e   : > { %1429 = vperm.xlu2 %1978, %v2154_v13   ;;  %1981 = vset.pattern.permute.xlu1 %v2062_v4 }
 0x22f   : > { %1226 = vperm.xlu1 %1981, %v3894_v25  }
 0x230   : > { %v3576_v16 = vpop.permute.xlu1 %1196 }
 0x231   : > { %v1418_v12 = vpop.permute.xlu2 %1417 }
 0x232   : > { %vm1464_vm0 = vcmp.eq.s32.totalorder %v2373_v22, %v1418_v12  ;;  %vm1463_vm1 = vcmp.eq.s32.totalorder %v2131_v2, %v1418_v12  ;;  %v1312_v12 = vpop.permute.xlu0 %1311 }
 0x236   : > { %1984 = vset.pattern.permute.xlu2 %v2064_v39 }
 0x237   : > { %1320 = vperm.xlu2 %1984, %v3886_v43   ;;  %1983 = vset.pattern.permute.xlu1 %v2063_v62 }
 0x238   : > { %1450 = vperm.xlu1 %1983, %v3894_v25   ;;  %v3584_v28 = vpop.permute.xlu1 %1202 }
 0x239   : > { %v1436_v13 = vpop.permute.xlu2 %1435 }
 0x23a   : > { %vm1476_vm5 = vcmp.eq.s32.totalorder %v2373_v22, %v1436_v13 }
 0x23f   : > { %1341 = vperm.xlu2 %1984, %v2192_v32  }
 0x240   : > { %1432 = vperm.xlu1 %1983, %v3886_v43   ;;  %v1212_v63 = vpop.permute.xlu1 %1211 }
 0x241   : > { %vm1252_vm3 = vcmp.eq.s32.totalorder %v2373_v22, %v1212_v63  ;;  %vm1251_vm6 = vcmp.eq.s32.totalorder %v2131_v2, %v1212_v63 }
 0x242   : > { %v1284_v39 = vsel %vm1252_vm3, 1.0, %v3409_v3  ;;  %v1271_v3 = vsel %vm1239_vm12, 1.0, %v3445_v23  ;;  %v1283_v36 = vsel %vm1251_vm6, 1.0, %v3406_v41 }
 0x243   : > { %v1236_v62 = vpop.permute.xlu2 %1235 }
 0x244   : > { %vm1268_vm10 = vcmp.eq.s32.totalorder %v2373_v22, %v1236_v62  ;;  %vm1267_vm4 = vcmp.eq.s32.totalorder %v2131_v2, %v1236_v62 }
 0x245   : > { %v1300_v29 = vsel %vm1268_vm10, 1.0, %v1188_v45 }
 0x246   : > { %v1412_v25 = vsel %vm1380_vm9, 1.0, %v1300_v29  ;;  %vm1475_vm9 = vcmp.eq.s32.totalorder %v2131_v2, %v1436_v13 }
 0x247   : > { %1985 = vset.pattern.permute.xlu2 %v2062_v4 }
 0x248   : > { %1232 = vperm.xlu2 %1985, %v3877_v57   ;;  %1453 = vperm.xlu1 %1983, %v2192_v32   ;;  %v1187_v32 = vsel %vm1155_vm14, 1.0, %v3316_v17  ;;  %vm1354_vm14 = vcmp.eq.s32.totalorder %v2373_v22, %v3581_v31 }
 0x249   : > { %v1306_v43 = vpop.permute.xlu1 %1305  ;;  %v1299_v15 = vsel %vm1267_vm4, 1.0, %v1187_v32 }
 0x24a   : > { %vm1351_vm7 = vcmp.eq.s32.totalorder %v2131_v2, %v1306_v43  ;;  %vm1352_vm11 = vcmp.eq.s32.totalorder %v2373_v22, %v1306_v43  ;;  %v1411_v17 = vsel %vm1379_vm8, 1.0, %v1299_v15 }
 0x24b   : > { %v1383_v35 = vsel %vm1351_vm7, 1.0, %v1271_v3  ;;  %v1384_v14 = vsel %vm1352_vm11, 1.0, %v1272_v10  ;;  %vm1242_vm7 = vcmp.eq.s32.totalorder %v2373_v22, %v3576_v16  ;;  %vm1353_vm11 = vcmp.eq.s32.totalorder %v2131_v2, %v3581_v31 }
 0x24c   : > { %v3605_v4 = vpop.permute.xlu2 %1326  ;;  %v1495_v6 = vsel %vm1463_vm1, 1.0, %v1383_v35  ;;  %v1496_v0 = vsel %vm1464_vm0, 1.0, %v1384_v14  ;;  %vm1241_vm1 = vcmp.eq.s32.totalorder %v2131_v2, %v3576_v16  ;;  %v1274_v20 = vsel %vm1242_vm7, 1.0, %v3345_v58  ;;  %v1315_v35 = vpop.permute.xlu0 %1314 }
 0x24d   : > { %1611 = vmatmul.f32.gmra.mxu0 %v1495_v6  ;;  %1824 = vmatmul.msk.f32.gmra.mxu1 %vm1543_vm13, %v1496_v0  ;;  %vm1366_vm15 = vcmp.eq.s32.totalorder %v2373_v22, %v3605_v4  ;;  %v1273_v54 = vsel %vm1241_vm1, 1.0, %v3342_v33  ;;  %v1386_v16 = vsel %vm1354_vm14, 1.0, %v1274_v20  ;;  %vm1246_vm14 = vcmp.eq.s32.totalorder %v2373_v22, %v3584_v28 }
 0x24e   : > { %v1385_v13 = vsel %vm1353_vm11, 1.0, %v1273_v54  ;;  %vm1245_vm11 = vcmp.eq.s32.totalorder %v2131_v2, %v3584_v28 }
 0x24f   : > { %v1277_v6 = vsel %vm1245_vm11, 1.0, %v3368_v11 }
 0x250   : > { %1456 = vperm.xlu1 %1983, %v3877_v57  }
 0x251   : > { %v1324_v23 = vpop.permute.xlu1 %1323 }
 0x252   : > { %vm1363_vm2 = vcmp.eq.s32.totalorder %v2131_v2, %v1324_v23  ;;  %vm1364_vm3 = vcmp.eq.s32.totalorder %v2373_v22, %v1324_v23 }
 0x253   : > { %v1395_v8 = vsel %vm1363_vm2, 1.0, %v1283_v36  ;;  %v1396_v37 = vsel %vm1364_vm3, 1.0, %v1284_v39  ;;  %vm1356_vm2 = vcmp.eq.s32.totalorder %v2373_v22, %v1312_v12  ;;  %vm1365_vm3 = vcmp.eq.s32.totalorder %v2131_v2, %v3605_v4 }
 0x254   : > { %v1507_v56 = vsel %vm1475_vm9, 1.0, %v1395_v8  ;;  %v3620_v57 = vsel %vm1476_vm5, 1.0, %v1396_v37  ;;  %vm1355_vm5 = vcmp.eq.s32.totalorder %v2131_v2, %v1312_v12  ;;  %vm1467_vm9 = vcmp.eq.s32.totalorder %v2131_v2, %v3571_v21 }
 0x255   : > { %v1460_v46 = vpop.permute.xlu2 %1459  ;;  %1629 = vmatmul.f32.vlgmr.msra.gmra.mxu2 %v1507_v56  ;;  %v1387_v31 = vsel %vm1355_vm5, 1.0, %v3523_v26  ;;  %v1388_v62 = vsel %vm1356_vm2, 1.0, %v3521_v44 }
 0x256   : > { %vm1492_vm10 = vcmp.eq.s32.totalorder %v2373_v22, %v1460_v46  ;;  %vm1491_vm12 = vcmp.eq.s32.totalorder %v2131_v2, %v1460_v46 }
 0x257   : > { %v1523_v49 = vsel %vm1491_vm12, 1.0, %v1411_v17  ;;  %v3626_v45 = vsel %vm1492_vm10, 1.0, %v1412_v25  ;;  %vm1468_vm10 = vcmp.eq.s32.totalorder %v2373_v22, %v3571_v21 }
 0x258   : > { %1653 = vmatmul.f32.vlgmr.msra.gmra.mxu3 %v1523_v49  ;;  %v1500_v21 = vsel %vm1468_vm10, 1.0, %v1388_v62 }
 0x25a   : > { %v1215_v41 = vpop.permute.xlu1 %1214 }
 0x25b   : > { %vm1254_vm0 = vcmp.eq.s32.totalorder %v2373_v22, %v1215_v41  ;;  %vm1253_vm8 = vcmp.eq.s32.totalorder %v2131_v2, %v1215_v41 }
 0x25c   : > { %v1286_v40 = vsel %vm1254_vm0, 1.0, %v3350_v61  ;;  %v1285_v33 = vsel %vm1253_vm8, 1.0, %v3354_v9  ;;  %v1499_v9 = vsel %vm1467_vm9, 1.0, %v1387_v31  ;;  %vm1358_vm8 = vcmp.eq.s32.totalorder %v2373_v22, %v1315_v35 }
 0x25d   : > { %v1398_v59 = vsel %vm1366_vm15, 1.0, %v1286_v40  ;;  %v1397_v29 = vsel %vm1365_vm3, 1.0, %v1285_v33 }
 0x25e   : > { %v3636_v5 = vpop.permute.xlu2 %1220 }
 0x25f   : > { %vm1258_vm0 = vcmp.eq.s32.totalorder %v2373_v22, %v3636_v5 }
 0x260   : > { %v1290_v44 = vsel %vm1258_vm0, 1.0, %v3440_v27  ;;  %v1278_v27 = vsel %vm1246_vm14, 1.0, %v3371_v51  ;;  %vm1257_vm14 = vcmp.eq.s32.totalorder %v2131_v2, %v3636_v5 }
 0x261   : > { %v1390_v32 = vsel %vm1358_vm8, 1.0, %v1278_v27  ;;  %v1289_v20 = vsel %vm1257_vm14, 1.0, %v3437_v50 }
 0x263   : > { %v1421_v61 = vpop.permute.xlu1 %1420 }
 0x264   : > { %vm1466_vm6 = vcmp.eq.s32.totalorder %v2373_v22, %v1421_v61  ;;  %vm1465_vm4 = vcmp.eq.s32.totalorder %v2131_v2, %v1421_v61 }
 0x265   : > { %v1497_v63 = vsel %vm1465_vm4, 1.0, %v1385_v13  ;;  %v1498_v1 = vsel %vm1466_vm6, 1.0, %v1386_v16  ;;  %vm1357_vm6 = vcmp.eq.s32.totalorder %v2131_v2, %v1315_v35 }
 0x266   : > { %1614 = vmatmul.f32.gmra.mxu0 %v1497_v63  ;;  %1825 = vmatmul.msk.f32.gmra.mxu1 %vm1543_vm13, %v1498_v1  ;;  %v1389_v28 = vsel %vm1357_vm6, 1.0, %v1277_v6 }
 0x267   : > { %v3649_v58 = vpop.permute.xlu2 %1332 }
 0x268   : > { %vm1370_vm1 = vcmp.eq.s32.totalorder %v2373_v22, %v3649_v58  ;;  %vm1369_vm6 = vcmp.eq.s32.totalorder %v2131_v2, %v3649_v58 }
 0x269   : > { %v1402_v3 = vsel %vm1370_vm1, 1.0, %v1290_v44  ;;  %v1401_v54 = vsel %vm1369_vm6, 1.0, %v1289_v20 }
 0x26b   : > { %v1439_v39 = vpop.permute.xlu1 %1438 }
 0x26c   : > { %vm1478_vm12 = vcmp.eq.s32.totalorder %v2373_v22, %v1439_v39  ;;  %vm1477_vm15 = vcmp.eq.s32.totalorder %v2131_v2, %v1439_v39 }
 0x26d   : > { %v1509_v25 = vsel %vm1477_vm15, 1.0, %v1397_v29  ;;  %v3665_v26 = vsel %vm1478_vm12, 1.0, %v1398_v59 }
 0x26e   : > { %1617 = vmatmul.f32.gmra.mxu0 %v1499_v9  ;;  %1632 = vmatmul.f32.gmra.mxu2 %v1509_v25 }
 0x26f   : > { %1826 = vmatmul.msk.f32.gmra.mxu1 %vm1543_vm13, %v1500_v21 }
 0x270   : > { %v1445_v43 = vpop.permute.xlu2 %1444 }
 0x271   : > { %vm1482_vm7 = vcmp.eq.s32.totalorder %v2373_v22, %v1445_v43 }
 0x272   : > { %v1514_v10 = vsel %vm1482_vm7, 1.0, %v1402_v3 }
 0x273   : > { %1833 = vmatmul.msk.f32.vlgmr.msrb.gmra.mxu3 %vm1543_vm13, %v1514_v10 }
 0x274   : > { %v1218_v14 = vpop.permute.xlu1 %1217 }
 0x275   : > { %vm1256_vm4 = vcmp.eq.s32.totalorder %v2373_v22, %v1218_v14  ;;  %vm1255_vm9 = vcmp.eq.s32.totalorder %v2131_v2, %v1218_v14 }
 0x276   : > { %v1288_v4 = vsel %vm1256_vm4, 1.0, %v3519_v38  ;;  %v1318_v38 = vpop.permute.xlu0 %1317  ;;  %v1287_v37 = vsel %vm1255_vm9, 1.0, %v3516_v53  ;;  %vm1481_vm4 = vcmp.eq.s32.totalorder %v2131_v2, %v1445_v43 }
 0x277   : > { %vm1359_vm12 = vcmp.eq.s32.totalorder %v2131_v2, %v1318_v38  ;;  %vm1360_vm15 = vcmp.eq.s32.totalorder %v2373_v22, %v1318_v38  ;;  %v1513_v61 = vsel %vm1481_vm4, 1.0, %v1401_v54 }
 0x278   : > { %v1427_v0 = vpop.permute.xlu2 %1426  ;;  %v1391_v41 = vsel %vm1359_vm12, 1.0, %v3544_v7  ;;  %v1392_v40 = vsel %vm1360_vm15, 1.0, %v3541_v34 }
 0x279   : > { %vm1470_vm5 = vcmp.eq.s32.totalorder %v2373_v22, %v1427_v0  ;;  %vm1469_vm2 = vcmp.eq.s32.totalorder %v2131_v2, %v1427_v0 }
 0x27a   : > { %v1501_v23 = vsel %vm1469_vm2, 1.0, %v1389_v28  ;;  %v1502_v36 = vsel %vm1470_vm5, 1.0, %v1390_v32 }
 0x27b   : > { %1620 = vmatmul.f32.gmra.mxu0 %v1501_v23  ;;  %1827 = vmatmul.msk.f32.gmra.mxu1 %vm1543_vm13, %v1502_v36 }
 0x27d   : > { %v1330_v8 = vpop.permute.xlu1 %1329 }
 0x27e   : > { %vm1368_vm3 = vcmp.eq.s32.totalorder %v2373_v22, %v1330_v8  ;;  %vm1367_vm10 = vcmp.eq.s32.totalorder %v2131_v2, %v1330_v8  ;;  %v1339_v1 = vpop.permute.xlu0 %1338 }
 0x27f   : > { %v1400_v51 = vsel %vm1368_vm3, 1.0, %v1288_v4  ;;  %v1399_v56 = vsel %vm1367_vm10, 1.0, %v1287_v37 }
 0x280   : > { %v1448_v15 = vpop.permute.xlu2 %1447 }
 0x281   : > { %vm1484_vm9 = vcmp.eq.s32.totalorder %v2373_v22, %v1448_v15  ;;  %vm1483_vm10 = vcmp.eq.s32.totalorder %v2131_v2, %v1448_v15 }
 0x286   : > { %v1442_v11 = vpop.permute.xlu1 %1441  ;;  %v1209_v62 = vpop.permute.xlu0 %1208 }
 0x287   : > { %vm1480_vm0 = vcmp.eq.s32.totalorder %v2373_v22, %v1442_v11  ;;  %vm1479_vm1 = vcmp.eq.s32.totalorder %v2131_v2, %v1442_v11  ;;  %vm1249_vm14 = vcmp.eq.s32.totalorder %v2131_v2, %v1209_v62  ;;  %vm1250_vm6 = vcmp.eq.s32.totalorder %v2373_v22, %v1209_v62 }
 0x288   : > { %v1430_v46 = vpop.permute.xlu2 %1429  ;;  %v1511_v17 = vsel %vm1479_vm1, 1.0, %v1399_v56  ;;  %v3694_v49 = vsel %vm1480_vm0, 1.0, %v1400_v51  ;;  %vm1373_vm0 = vcmp.eq.s32.totalorder %v2131_v2, %v1339_v1  ;;  %vm1374_vm1 = vcmp.eq.s32.totalorder %v2373_v22, %v1339_v1 }
 0x289   : > { %vm1472_vm7 = vcmp.eq.s32.totalorder %v2373_v22, %v1430_v46  ;;  %1635 = vmatmul.f32.gmra.mxu2 %v1511_v17  ;;  %vm1471_vm11 = vcmp.eq.s32.totalorder %v2131_v2, %v1430_v46  ;;  %v1282_v43 = vsel %vm1250_vm6, 1.0, %v3505_v55  ;;  %v1281_v10 = vsel %vm1249_vm14, 1.0, %v3502_v19 }
 0x28a   : > { %v1503_v59 = vsel %vm1471_vm11, 1.0, %v1391_v41  ;;  %v1504_v53 = vsel %vm1472_vm7, 1.0, %v1392_v40 }
 0x28b   : > { %1623 = vmatmul.f32.gmra.mxu0 %v1503_v59  ;;  %1828 = vmatmul.msk.f32.gmra.mxu1 %vm1543_vm13, %v1504_v53 }
 0x28e   : > { %v1230_v27 = vpop.permute.xlu0 %1229 }
 0x28f   : > { %v1224_v7 = vpop.permute.xlu1 %1223 }
 0x290   : > { %vm1259_vm8 = vcmp.eq.s32.totalorder %v2131_v2, %v1224_v7  ;;  %vm1260_vm5 = vcmp.eq.s32.totalorder %v2373_v22, %v1224_v7 }
 0x291   : > { %1638 = vmatmul.f32.gmra.mxu2 %v1513_v61  ;;  %v1292_v5 = vsel %vm1260_vm5, 1.0, %v3384_v42  ;;  %v1291_v12 = vsel %vm1259_vm8, 1.0, %v3388_v24  ;;  %v1321_v58 = vpop.permute.xlu2 %1320 }
 0x292   : > { %vm1361_vm4 = vcmp.eq.s32.totalorder %v2131_v2, %v1321_v58  ;;  %vm1362_vm8 = vcmp.eq.s32.totalorder %v2373_v22, %v1321_v58 }
 0x293   : > { %v1393_v35 = vsel %vm1361_vm4, 1.0, %v1281_v10  ;;  %v1394_v14 = vsel %vm1362_vm8, 1.0, %v1282_v43 }
 0x296   : > { %v1345_v51 = vpop.permute.xlu0 %1344 }
 0x297   : > { %vm1378_vm14 = vcmp.eq.s32.totalorder %v2373_v22, %v1345_v51 }
 0x298   : > { %v1336_v34 = vpop.permute.xlu1 %1335 }
 0x299   : > { %vm1371_vm2 = vcmp.eq.s32.totalorder %v2131_v2, %v1336_v34  ;;  %vm1372_vm3 = vcmp.eq.s32.totalorder %v2373_v22, %v1336_v34  ;;  %v1342_v44 = vpop.permute.xlu2 %1341 }
 0x29a   : > { %v1403_v50 = vsel %vm1371_vm2, 1.0, %v1291_v12  ;;  %v1404_v13 = vsel %vm1372_vm3, 1.0, %v1292_v5  ;;  %vm1263_vm3 = vcmp.eq.s32.totalorder %v2131_v2, %v1230_v27 }
 0x29b   : > { %v1515_v16 = vsel %vm1483_vm10, 1.0, %v1403_v50  ;;  %v1516_v63 = vsel %vm1484_vm9, 1.0, %v1404_v13  ;;  %vm1264_vm9 = vcmp.eq.s32.totalorder %v2373_v22, %v1230_v27  ;;  %vm1375_vm10 = vcmp.eq.s32.totalorder %v2131_v2, %v1342_v44 }
 0x29c   : > { %1641 = vmatmul.f32.gmra.mxu2 %v1515_v16  ;;  %1834 = vmatmul.msk.f32.gmra.mxu3 %vm1543_vm13, %v1516_v63  ;;  %v1296_v19 = vsel %vm1264_vm9, 1.0, %v3472_v52  ;;  %v1295_v28 = vsel %vm1263_vm3, 1.0, %v3469_v30 }
 0x29d   : > { %v1407_v32 = vsel %vm1375_vm10, 1.0, %v1295_v28 }
 0x2a1   : > { %v1227_v42 = vpop.permute.xlu1 %1226 }
 0x2a2   : > { %vm1261_vm12 = vcmp.eq.s32.totalorder %v2131_v2, %v1227_v42  ;;  %vm1262_vm15 = vcmp.eq.s32.totalorder %v2373_v22, %v1227_v42  ;;  %v1233_v55 = vpop.permute.xlu2 %1232 }
 0x2a3   : > { %v1294_v24 = vsel %vm1262_vm15, 1.0, %v3538_v18  ;;  %v1293_v33 = vsel %vm1261_vm12, 1.0, %v3535_v48  ;;  %vm1376_vm12 = vcmp.eq.s32.totalorder %v2373_v22, %v1342_v44 }
 0x2a4   : > { %v1405_v25 = vsel %vm1373_vm0, 1.0, %v1293_v33  ;;  %v1406_v21 = vsel %vm1374_vm1, 1.0, %v1294_v24  ;;  %v1408_v23 = vsel %vm1376_vm12, 1.0, %v1296_v19  ;;  %vm1265_vm1 = vcmp.eq.s32.totalorder %v2131_v2, %v1233_v55 }
 0x2a5   : > { %v1297_v30 = vsel %vm1265_vm1, 1.0, %v3420_v47 }
 0x2a9   : > { %v1609_v31 = vpop.f32.mrf.mxu0  ;;  %v1674_v39 = vpop.f32.mrf.mxu1 }
 0x2aa   : > { %v1451_v29 = vpop.permute.xlu1 %1450  ;;  %v1675_v9 = vadd.f32 %v1674_v39, %v1609_v31 }
 0x2ab   : > { %vm1486_vm7 = vcmp.eq.s32.totalorder %v2373_v22, %v1451_v29  ;;  %vm1485_vm11 = vcmp.eq.s32.totalorder %v2131_v2, %v1451_v29 }
 0x2ac   : > { %1722 = vst [vmem:[%s3727_s26] sm:$0xff] %v1675_v9  ;;  %v1517_v48 = vsel %vm1485_vm11, 1.0, %v1405_v25  ;;  %v1518_v18 = vsel %vm1486_vm7, 1.0, %v1406_v21  ;;  %vm1266_vm7 = vcmp.eq.s32.totalorder %v2373_v22, %v1233_v55  ;;  %vm1377_vm11 = vcmp.eq.s32.totalorder %v2131_v2, %v1345_v51 }
 0x2ad   : > { %1644 = vmatmul.f32.gmra.mxu2 %v1517_v48  ;;  %1835 = vmatmul.msk.f32.gmra.mxu3 %vm1543_vm13, %v1518_v18  ;;  %v1298_v52 = vsel %vm1266_vm7, 1.0, %v3424_v60  ;;  %v1409_v11 = vsel %vm1377_vm11, 1.0, %v1297_v30 }
 0x2ae   : > { %v1410_v38 = vsel %vm1378_vm14, 1.0, %v1298_v52 }
 0x2b2   : > { %v1433_v3 = vpop.permute.xlu1 %1432 }
 0x2b3   : > { %vm1474_vm5 = vcmp.eq.s32.totalorder %v2373_v22, %v1433_v3  ;;  %vm1473_vm2 = vcmp.eq.s32.totalorder %v2131_v2, %v1433_v3 }
 0x2b4   : > { %v1505_v4 = vsel %vm1473_vm2, 1.0, %v1393_v35  ;;  %v1506_v6 = vsel %vm1474_vm5, 1.0, %v1394_v14 }
 0x2b5   : > { %1626 = vmatmul.f32.gmra.mxu0 %v1505_v4  ;;  %1829 = vmatmul.msk.f32.gmra.mxu1 %vm1543_vm13, %v1506_v6 }
 0x2ba   : > { %v1454_v0 = vpop.permute.xlu1 %1453 }
 0x2bb   : > { %vm1488_vm15 = vcmp.eq.s32.totalorder %v2373_v22, %v1454_v0  ;;  %vm1487_vm0 = vcmp.eq.s32.totalorder %v2131_v2, %v1454_v0 }
 0x2bc   : > { %v1519_v36 = vsel %vm1487_vm0, 1.0, %v1407_v32  ;;  %v1520_v8 = vsel %vm1488_vm15, 1.0, %v1408_v23 }
 0x2bd   : > { %1647 = vmatmul.f32.gmra.mxu2 %v1519_v36  ;;  %1830 = vmatmul.msk.f32.gmra.mxu1 %vm1543_vm13, %v3620_v57 }
 0x2be   : > { %1836 = vmatmul.msk.f32.gmra.mxu3 %vm1543_vm13, %v1520_v8 }
 0x2c2   : > { %v1457_v15 = vpop.permute.xlu1 %1456 }
 0x2c3   : > { %vm1489_vm6 = vcmp.eq.s32.totalorder %v2131_v2, %v1457_v15  ;;  %vm1490_vm4 = vcmp.eq.s32.totalorder %v2373_v22, %v1457_v15 }
 0x2c4   : > { %v1522_v57 = vsel %vm1490_vm4, 1.0, %v1410_v38  ;;  %v1521_v37 = vsel %vm1489_vm6, 1.0, %v1409_v11 }
 0x2c5   : > { %1650 = vmatmul.f32.gmra.mxu2 %v1521_v37  ;;  %1831 = vmatmul.msk.f32.gmra.mxu1 %vm1543_vm13, %v3665_v26 }
 0x2c6   : > { %1837 = vmatmul.msk.f32.gmra.mxu3 %vm1543_vm13, %v1522_v57 }
 0x2ca   : > { %v1612_v47 = vpop.f32.mrf.mxu0  ;;  %v1677_v60 = vpop.f32.mrf.mxu1 }
 0x2cb   : > { %v1678_v56 = vadd.f32 %v1677_v60, %v1612_v47 }
 0x2cd   : > { %1723 = vst [vmem:[%s3727_s26 + $0x8] sm:$0xff] %v1678_v56  ;;  %1832 = vmatmul.msk.f32.gmra.mxu1 %vm1543_vm13, %v3694_v49 }
 0x2ce   : > { %1838 = vmatmul.msk.f32.gmra.mxu3 %vm1543_vm13, %v3626_v45 }
 0x2d8   : > { %v1630_v20 = vpop.f32.mrf.mxu2 }
 0x2db   : > { %v1654_v61 = vpop.f32.mrf.mxu3 }
 0x2e3   : > { %v1615_v2 = vpop.f32.mrf.mxu0  ;;  %v1680_v22 = vpop.f32.mrf.mxu1 }
 0x2e4   : > { %v1681_v46 = vadd.f32 %v1680_v22, %v1615_v2 }
 0x2e6   : > { %1724 = vst [vmem:[%s3727_s26 + $0x10] sm:$0xff] %v1681_v46 }
 0x2eb   : > { %v1618_v17 = vpop.f32.mrf.mxu0 }
 0x2ec   : > { %v1683_v26 = vpop.f32.mrf.mxu1 }
 0x2ed   : > { %v1684_v41 = vadd.f32 %v1683_v26, %v1618_v17 }
 0x2ef   : > { %1725 = vst [vmem:[%s3727_s26 + $0x18] sm:$0xff] %v1684_v41 }
 0x2f1   : > { %v1633_v49 = vpop.f32.mrf.mxu2 }
 0x2f6   : > { %v1704_v5 = vpop.f32.mrf.mxu3 }
 0x2f8   : > { %v1621_v40 = vpop.f32.mrf.mxu0  ;;  %v1686_v59 = vpop.f32.mrf.mxu1 }
 0x2f9   : > { %v1687_v53 = vadd.f32 %v1686_v59, %v1621_v40 }
 0x2fb   : > { %1726 = vst [vmem:[%s3727_s26 + $0x20] sm:$0xff] %v1687_v53 }
 0x308   : > { %v1624_v7 = vpop.f32.mrf.mxu0  ;;  %v1689_v54 = vpop.f32.mrf.mxu1 }
 0x309   : > { %v1690_v45 = vadd.f32 %v1689_v54, %v1624_v7 }
 0x30b   : > { %1727 = vst [vmem:[%s3727_s26 + $0x28] sm:$0xff] %v1690_v45 }
 0x30c   : > { %v1636_v34 = vpop.f32.mrf.mxu2 }
 0x314   : > { %v1639_v12 = vpop.f32.mrf.mxu2 }
 0x315   : > { %v1705_v50 = vadd.f32 %v1704_v5, %v1639_v12 }
 0x317   : > { %1732 = vst [vmem:[%s3727_s26 + $0x50] sm:$0xff] %v1705_v50 }
 0x31f   : > { %v1642_v13 = vpop.f32.mrf.mxu2  ;;  %v1707_v16 = vpop.f32.mrf.mxu3 }
 0x320   : > { %v1708_v63 = vadd.f32 %v1707_v16, %v1642_v13 }
 0x322   : > { %1733 = vst [vmem:[%s3727_s26 + $0x58] sm:$0xff] %v1708_v63 }
 0x330   : > { %v1645_v1 = vpop.f32.mrf.mxu2  ;;  %v1710_v42 = vpop.f32.mrf.mxu3 }
 0x331   : > { %v1711_v58 = vadd.f32 %v1710_v42, %v1645_v1 }
 0x332   : > { %v1627_v24 = vpop.f32.mrf.mxu0  ;;  %v1692_v33 = vpop.f32.mrf.mxu1 }
 0x333   : > { %1734 = vst [vmem:[%s3727_s26 + $0x60] sm:$0xff] %v1711_v58  ;;  %v1693_v31 = vadd.f32 %v1692_v33, %v1627_v24 }
 0x335   : > { %1728 = vst [vmem:[%s3727_s26 + $0x30] sm:$0xff] %v1693_v31 }
 0x33a   : > { %v1695_v39 = vpop.f32.mrf.mxu1 }
 0x33b   : > { %v1696_v62 = vadd.f32 %v1695_v39, %v1630_v20 }
 0x33d   : > { %1729 = vst [vmem:[%s3727_s26 + $0x38] sm:$0xff] %v1696_v62 }
 0x340   : > { %v1648_v29 = vpop.f32.mrf.mxu2 }
 0x341   : > { %v1713_v9 = vpop.f32.mrf.mxu3 }
 0x342   : > { %v1714_v25 = vadd.f32 %v1713_v9, %v1648_v29  ;;  %v1698_v21 = vpop.f32.mrf.mxu1 }
 0x343   : > { %v1699_v48 = vadd.f32 %v1698_v21, %v1633_v49 }
 0x344   : > { %1735 = vst [vmem:[%s3727_s26 + $0x68] sm:$0xff] %v1714_v25 }
 0x345   : > { %1730 = vst [vmem:[%s3727_s26 + $0x40] sm:$0xff] %v1699_v48 }
 0x348   : > { %v1651_v18 = vpop.f32.mrf.mxu2 }
 0x349   : > { %v1716_v44 = vpop.f32.mrf.mxu3 }
 0x34a   : > { %v1717_v43 = vadd.f32 %v1716_v44, %v1651_v18  ;;  %v1701_v3 = vpop.f32.mrf.mxu1 }
 0x34b   : > { %v1702_v10 = vadd.f32 %v1701_v3, %v1636_v34 }
 0x34c   : > { %1736 = vst [vmem:[%s3727_s26 + $0x70] sm:$0xff] %v1717_v43 }
 0x34d   : > { %1731 = vst [vmem:[%s3727_s26 + $0x48] sm:$0xff] %v1702_v10 }
 0x351   : > { %v1719_v35 = vpop.f32.mrf.mxu3 }
 0x352   : > { %v1720_v14 = vadd.f32 %v1719_v35, %v1654_v61 }
 0x354   : > { %1737 = vst [vmem:[%s3727_s26 + $0x78] sm:$0xff] %v1720_v14 }
 0x355   : > { %2015 = shalt.err (!%p2012_p3)
}
 0x356   : > { %s2065_s21 = smov 128   ;;  %s2066_s22 = smov 8  }
 0x357   : > { %1879 = dma.vmem_to_hbm [thread:$0]  (%p2120_p5), %s1752_s3, 2048, %s1754_s4, %s1739_s13, %s2065_s21, %s2065_s21, %s2066_s22  }
 0x358 PF: > { %p1885_p4 = scmp.ge.s32.totalorder %s2050_s12, 2  ;;  %s1768_s23 = sand.u32 1, %s2038_s9  }
 0x359   : > { %s1769_s24 = scalar_lea.sflag [#allocation3], %s1768_s23 }
 0x35a   : > { %p1882_p7 = pnand %p1885_p4, %p2124_p6 }
 0x35c   : > { %p1883_p8 = pneg %p1882_p7 }
 0x35e   : > { %2033 = dma.done.wait (%p1883_p8), %s1769_s24, 2048  }
 0x35f   : > { %2035 = vsyncadd (%p1883_p8), %s1769_s24, 4294965248  ;;  %p12_p9 = scmp.ge.s32.totalorder %s2107_s15, 4   ;;  %s3895_s9 = smov %s2042_s10 }
 0x360   : > { %s3896_s10 = smov %s2046_s11  ;;  %s3897_s11 = smov %s2118_s18 }
 0x361   : > { %s3898_s12 = smov %s2107_s15  ;;  %14 = sbr.rel (!%p12_p9) target bundleno = 3 (0x3), region = 63 }
 0x366   :  { %1775 = vsyncpa [#allocation3], 1 }
 0x367   :  { %1777 = vsyncpa [#allocation3 + $0x1], 1 }

</bundles_post_ra>
